<compile_context>
chip_gen: v7x
topology: tpu7x:2x2x1
jax: 0.10.0
libtpu: 0.0.40
codegen_flags: <defaults>
</compile_context>

<pallas_src>
import jax
import jax.numpy as jnp
from jax import lax
from jax.experimental import pallas as pl
from jax.experimental.pallas import tpu as pltpu


# Contract dim 1 of lhs with dim 1 of rhs (i.e. lhs @ rhs^T on the MXU).
_FEAT_CONTRACT = (((1,), (1,)), ((), ()))


def _critic_kernel(xs_ref, xa_ref, w1s_ref, w1a_ref, b1_ref,
                   w2_ref, b2_ref, w3_ref, b3_ref, q_ref):
    # xs_ref [TB, S], xa_ref [TB, A] (batch-major, as stored by the caller);
    # weights in PyTorch layout [out, in]; q_ref [1, TB] (lane-dense).
    # fc1 + ReLU: contract on the feature axis -> feature-major [16, TB].
    h1 = (lax.dot_general(w1s_ref[...], xs_ref[...], _FEAT_CONTRACT,
                          preferred_element_type=jnp.float32)
          + lax.dot_general(w1a_ref[...], xa_ref[...], _FEAT_CONTRACT,
                            preferred_element_type=jnp.float32)
          + b1_ref[...])
    h1 = jnp.maximum(h1, 0.0)                                     # [16, TB]
    # fc2 + ReLU -> [16, TB]
    h2 = jnp.dot(w2_ref[...], h1, preferred_element_type=jnp.float32) + b2_ref[...]
    h2 = jnp.maximum(h2, 0.0)
    # fc3 -> [1, TB]  (lane-dense row store)
    q = jnp.dot(w3_ref[...], h2, preferred_element_type=jnp.float32) + b3_ref[...]
    q_ref[...] = q.astype(q_ref.dtype)


def _pick_batch_tile(batch, max_tb=16384):
    """128-aligned batch tile, targeting an even tile count >= 2 (v7x 2 TCs).

    max_tb=16K keeps per-step VMEM (double-buffered xs/xa tiles + the
    [16, TB] f32 intermediates) around ~5 MiB -- well under v5e's 16 MiB
    default scoped VMEM and v7x's 64 MiB physical VMEM.
    """
    if batch < 256:
        return batch  # single full-width block (only via force_pallas)
    n_tiles = max(2, 2 * pl.cdiv(pl.cdiv(batch, 2), max_tb))  # even count
    return ((pl.cdiv(batch, n_tiles) + 127) // 128) * 128


def _const_spec(shape):
    # Weights/biases: constant block index -> fetched once, VMEM-resident.
    return pl.BlockSpec(shape, lambda *_: (0,) * len(shape))


def _critic_xla(state, action, p):
    """Fused tiny-matmul path for small batches (Pallas only loses here)."""
    h = jnp.maximum(state @ p["w1s"].T + action @ p["w1a"].T
                    + p["b1"].reshape(-1), 0.0)
    h = jnp.maximum(h @ p["w2"].T + p["b2"].reshape(-1), 0.0)
    return h @ p["w3"].T + p["b3"].reshape(-1)          # [B, 1]


def critic_forward(state, action, params, *, batch_tile=None,
                   min_pallas_batch=1024, force_pallas=False):
    """state: [B, state_dim], action: [B, action_dim] -> q: [B, 1]."""
    B, state_dim = state.shape
    action_dim = action.shape[1]

    if not force_pallas and B < min_pallas_batch:
        return _critic_xla(state, action, params)

    w1s, w1a, b1 = params["w1s"], params["w1a"], params["b1"]
    w2, b2, w3, b3 = params["w2"], params["b2"], params["w3"], params["b3"]

    tb = batch_tile if batch_tile is not None else _pick_batch_tile(B)
    if tb != B and tb % 128 != 0:
        raise ValueError(f"batch_tile must be a multiple of 128 or equal B, got {tb}")
    grid = (pl.cdiv(B, tb),)   # ragged B -> masked tail block, never tiny tiles

    q_row = pl.pallas_call(
        _critic_kernel,
        out_shape=jax.ShapeDtypeStruct((1, B), jnp.float32),
        grid=grid,
        in_specs=[
            pl.BlockSpec((tb, state_dim), lambda i: (i, 0)),   # streamed tiles
            pl.BlockSpec((tb, action_dim), lambda i: (i, 0)),  # streamed tiles
            _const_spec(w1s.shape),
            _const_spec(w1a.shape),
            _const_spec(b1.shape),
            _const_spec(w2.shape),
            _const_spec(b2.shape),
            _const_spec(w3.shape),
            _const_spec(b3.shape),
        ],
        out_specs=pl.BlockSpec((1, tb), lambda i: (0, i)),
        compiler_params=pltpu.CompilerParams(
            dimension_semantics=("parallel",)),
    )(state, action, w1s, w1a, b1, w2, b2, w3, b3)

    # (1, B) -> (B, 1): identical row-major bit layout.
    return q_row.reshape(B, 1)


def init_critic_params(key, state_dim, action_dim, hidden=16, dtype=jnp.float32):
    """Kernel-ready params matching nn.Linear init (W: [out, in], b: [out])."""
    def linear(k, fan_in, fan_out):
        kw, kb = jax.random.split(k)
        bound = 1.0 / (fan_in ** 0.5)
        w = jax.random.uniform(kw, (fan_out, fan_in), dtype, -bound, bound)
        b = jax.random.uniform(kb, (fan_out,), dtype, -bound, bound)
        return w, b

    k1, k2, k3 = jax.random.split(key, 3)
    w1, b1 = linear(k1, state_dim + action_dim, hidden)
    w2, b2 = linear(k2, hidden, hidden)
    w3, b3 = linear(k3, hidden, 1)
    return {
        "w1s": w1[:, :state_dim],       # [hidden, state_dim]
        "w1a": w1[:, state_dim:],       # [hidden, action_dim]
        "b1": b1.reshape(hidden, 1),    # [hidden, 1]
        "w2": w2,                       # [hidden, hidden]
        "b2": b2.reshape(hidden, 1),
        "w3": w3,                       # [1, hidden]
        "b3": b3.reshape(1, 1),
    }


def _critic_ref(state, action, p):
    """Pure-JAX batch-major reference mirroring the PyTorch forward."""
    sa = jnp.concatenate([state, action], axis=1)
    w1 = jnp.concatenate([p["w1s"], p["w1a"]], axis=1)
    h = jnp.maximum(sa @ w1.T + p["b1"].reshape(-1), 0.0)
    h = jnp.maximum(h @ p["w2"].T + p["b2"].reshape(-1), 0.0)
    return h @ p["w3"].T + p["b3"].reshape(-1)


if __name__ == "__main__":
    key = jax.random.PRNGKey(0)
    k_param, k_state, k_action = jax.random.split(key, 3)

    state_dim, action_dim = 12, 4
    params = init_critic_params(k_param, state_dim, action_dim)

    # Pallas path: grid of 2 "parallel" tiles of 1024 lane-dense batch columns.
    batch = 2048
    state = jax.random.normal(k_state, (batch, state_dim), jnp.float32)
    action = jax.random.normal(k_action, (batch, action_dim), jnp.float32)

    q = jax.block_until_ready(critic_forward(state, action, params))
    q_ref = _critic_ref(state, action, params)
    assert q.shape == (batch, 1), q.shape
    assert jnp.allclose(q, q_ref, atol=1e-4, rtol=1e-4)

    # Ragged batch forced through Pallas (cdiv grid + masked tail: tb=256,
    # grid=2, second tile has only 44 valid columns).
    ragged = 300
    q_r = jax.block_until_ready(
        critic_forward(state[:ragged], action[:ragged], params,
                       force_pallas=True))
    assert q_r.shape == (ragged, 1), q_r.shape
    assert jnp.allclose(q_r, q_ref[:ragged], atol=1e-4, rtol=1e-4)

    # Tiny batch: dispatched to the fused XLA path (a pallas_call only loses
    # here -- launch + 9 DMA streams for ~1 KB of useful data).
    small = 8
    q_s = jax.block_until_ready(
        critic_forward(state[:small], action[:small], params))
    assert q_s.shape == (small, 1), q_s.shape
    assert jnp.allclose(q_s, q_ref[:small], atol=1e-4, rtol=1e-4)

    print("KERNEL_OK")
</pallas_src>

<mosaic_0001>
module attributes {stable_mosaic.version = 11 : i64} {
  func.func @_critic_kernel(%arg0: i32, %arg1: memref<1024x12xf32, #tpu.memory_space<vmem>>, %arg2: memref<1024x4xf32, #tpu.memory_space<vmem>>, %arg3: memref<16x12xf32, #tpu.memory_space<vmem>>, %arg4: memref<16x4xf32, #tpu.memory_space<vmem>>, %arg5: memref<16x1xf32, #tpu.memory_space<vmem>>, %arg6: memref<16x16xf32, #tpu.memory_space<vmem>>, %arg7: memref<16x1xf32, #tpu.memory_space<vmem>>, %arg8: memref<1x16xf32, #tpu.memory_space<vmem>>, %arg9: memref<1x1xf32, #tpu.memory_space<vmem>>, %arg10: memref<1x1024xf32, #tpu.memory_space<vmem>>) attributes {dimension_semantics = [#tpu.dimension_semantics<parallel>], iteration_bounds = array<i64: 2>, scalar_prefetch = 0 : i64, scratch_operands = 0 : i64, tpu.core_type = #tpu.core_type<tc>, window_params = [{transform_indices = @transform_0, window_bounds = array<i64: 1024, 12>}, {transform_indices = @transform_1, window_bounds = array<i64: 1024, 4>}, {pipeline_mode = #tpu.pipeline_mode<synchronous>, transform_indices = @transform_2, window_bounds = array<i64: 16, 12>}, {pipeline_mode = #tpu.pipeline_mode<synchronous>, transform_indices = @transform_3, window_bounds = array<i64: 16, 4>}, {pipeline_mode = #tpu.pipeline_mode<synchronous>, transform_indices = @transform_4, window_bounds = array<i64: 16, 1>}, {pipeline_mode = #tpu.pipeline_mode<synchronous>, transform_indices = @transform_5, window_bounds = array<i64: 16, 16>}, {pipeline_mode = #tpu.pipeline_mode<synchronous>, transform_indices = @transform_6, window_bounds = array<i64: 16, 1>}, {pipeline_mode = #tpu.pipeline_mode<synchronous>, transform_indices = @transform_7, window_bounds = array<i64: 1, 16>}, {pipeline_mode = #tpu.pipeline_mode<synchronous>, transform_indices = @transform_8, window_bounds = array<i64: 1, 1>}, {transform_indices = @transform_9, window_bounds = array<i64: 1, 1024>}]} {
    %c0 = arith.constant 0 : index
    %c0_0 = arith.constant 0 : index
    %0 = vector.load %arg3[%c0, %c0_0] : memref<16x12xf32, #tpu.memory_space<vmem>>, vector<16x12xf32>
    %c0_1 = arith.constant 0 : index
    %c0_2 = arith.constant 0 : index
    %1 = vector.load %arg1[%c0_1, %c0_2] : memref<1024x12xf32, #tpu.memory_space<vmem>>, vector<1024x12xf32>
    %cst = arith.constant dense<0.000000e+00> : vector<16x1024xf32>
    %2 = tpu.matmul %0, %1, %cst {dimension_numbers = #tpu.dot_dimension_numbers<[1], [1], [0], [0], [0, 0, 1, 0], [], []>} : vector<16x12xf32>, vector<1024x12xf32>, vector<16x1024xf32> -> vector<16x1024xf32>
    %c0_3 = arith.constant 0 : index
    %c0_4 = arith.constant 0 : index
    %3 = vector.load %arg4[%c0_3, %c0_4] : memref<16x4xf32, #tpu.memory_space<vmem>>, vector<16x4xf32>
    %c0_5 = arith.constant 0 : index
    %c0_6 = arith.constant 0 : index
    %4 = vector.load %arg2[%c0_5, %c0_6] : memref<1024x4xf32, #tpu.memory_space<vmem>>, vector<1024x4xf32>
    %cst_7 = arith.constant dense<0.000000e+00> : vector<16x1024xf32>
    %5 = tpu.matmul %3, %4, %cst_7 {dimension_numbers = #tpu.dot_dimension_numbers<[1], [1], [0], [0], [0, 0, 1, 0], [], []>} : vector<16x4xf32>, vector<1024x4xf32>, vector<16x1024xf32> -> vector<16x1024xf32>
    %6 = arith.addf %2, %5 : vector<16x1024xf32>
    %c0_8 = arith.constant 0 : index
    %c0_9 = arith.constant 0 : index
    %7 = vector.load %arg5[%c0_8, %c0_9] : memref<16x1xf32, #tpu.memory_space<vmem>>, vector<16x1xf32>
    %8 = vector.broadcast %7 : vector<16x1xf32> to vector<16x1024xf32>
    %9 = arith.addf %6, %8 : vector<16x1024xf32>
    %cst_10 = arith.constant 0.000000e+00 : f32
    %10 = vector.broadcast %cst_10 : f32 to vector<16x1024xf32>
    %11 = arith.maximumf %9, %10 : vector<16x1024xf32>
    %c0_11 = arith.constant 0 : index
    %c0_12 = arith.constant 0 : index
    %12 = vector.load %arg6[%c0_11, %c0_12] : memref<16x16xf32, #tpu.memory_space<vmem>>, vector<16x16xf32>
    %cst_13 = arith.constant dense<0.000000e+00> : vector<16x1024xf32>
    %13 = tpu.matmul %12, %11, %cst_13 {dimension_numbers = #tpu.dot_dimension_numbers<[1], [0], [0], [1], [0, 0, 1, 1], [], []>} : vector<16x16xf32>, vector<16x1024xf32>, vector<16x1024xf32> -> vector<16x1024xf32>
    %c0_14 = arith.constant 0 : index
    %c0_15 = arith.constant 0 : index
    %14 = vector.load %arg7[%c0_14, %c0_15] : memref<16x1xf32, #tpu.memory_space<vmem>>, vector<16x1xf32>
    %15 = vector.broadcast %14 : vector<16x1xf32> to vector<16x1024xf32>
    %16 = arith.addf %13, %15 : vector<16x1024xf32>
    %cst_16 = arith.constant 0.000000e+00 : f32
    %17 = vector.broadcast %cst_16 : f32 to vector<16x1024xf32>
    %18 = arith.maximumf %16, %17 : vector<16x1024xf32>
    %c0_17 = arith.constant 0 : index
    %c0_18 = arith.constant 0 : index
    %19 = vector.load %arg8[%c0_17, %c0_18] : memref<1x16xf32, #tpu.memory_space<vmem>>, vector<1x16xf32>
    %cst_19 = arith.constant dense<0.000000e+00> : vector<1x1024xf32>
    %20 = tpu.matmul %19, %18, %cst_19 {dimension_numbers = #tpu.dot_dimension_numbers<[1], [0], [0], [1], [0, 0, 1, 1], [], []>} : vector<1x16xf32>, vector<16x1024xf32>, vector<1x1024xf32> -> vector<1x1024xf32>
    %c0_20 = arith.constant 0 : index
    %c0_21 = arith.constant 0 : index
    %21 = vector.load %arg9[%c0_20, %c0_21] : memref<1x1xf32, #tpu.memory_space<vmem>>, vector<1x1xf32>
    %22 = vector.broadcast %21 : vector<1x1xf32> to vector<1x1024xf32>
    %23 = arith.addf %20, %22 : vector<1x1024xf32>
    %c0_22 = arith.constant 0 : index
    %c0_23 = arith.constant 0 : index
    %24 = vector.load %arg10[%c0_22, %c0_23] : memref<1x1024xf32, #tpu.memory_space<vmem>>, vector<1x1024xf32>
    tpu.vector_store %arg10[%c0_22, %c0_23], %23 {strides = array<i32>} : memref<1x1024xf32, #tpu.memory_space<vmem>>, vector<1x1024xf32>,
    return
  }
  func.func @transform_0(%arg0: i32) -> (i32, i32) {
    %c0_i32 = arith.constant 0 : i32
    %c0_i32_0 = arith.constant 0 : i32
    return %arg0, %c0_i32 : i32, i32
  }
  func.func @transform_1(%arg0: i32) -> (i32, i32) {
    %c0_i32 = arith.constant 0 : i32
    %c0_i32_0 = arith.constant 0 : i32
    return %arg0, %c0_i32 : i32, i32
  }
  func.func @transform_2(%arg0: i32) -> (i32, i32) {
    %c0_i32 = arith.constant 0 : i32
    %c0_i32_0 = arith.constant 0 : i32
    %c0_i32_1 = arith.constant 0 : i32
    return %c0_i32, %c0_i32_0 : i32, i32
  }
  func.func @transform_3(%arg0: i32) -> (i32, i32) {
    %c0_i32 = arith.constant 0 : i32
    %c0_i32_0 = arith.constant 0 : i32
    %c0_i32_1 = arith.constant 0 : i32
    return %c0_i32, %c0_i32_0 : i32, i32
  }
  func.func @transform_4(%arg0: i32) -> (i32, i32) {
    %c0_i32 = arith.constant 0 : i32
    %c0_i32_0 = arith.constant 0 : i32
    %c0_i32_1 = arith.constant 0 : i32
    return %c0_i32, %c0_i32_0 : i32, i32
  }
  func.func @transform_5(%arg0: i32) -> (i32, i32) {
    %c0_i32 = arith.constant 0 : i32
    %c0_i32_0 = arith.constant 0 : i32
    %c0_i32_1 = arith.constant 0 : i32
    return %c0_i32, %c0_i32_0 : i32, i32
  }
  func.func @transform_6(%arg0: i32) -> (i32, i32) {
    %c0_i32 = arith.constant 0 : i32
    %c0_i32_0 = arith.constant 0 : i32
    %c0_i32_1 = arith.constant 0 : i32
    return %c0_i32, %c0_i32_0 : i32, i32
  }
  func.func @transform_7(%arg0: i32) -> (i32, i32) {
    %c0_i32 = arith.constant 0 : i32
    %c0_i32_0 = arith.constant 0 : i32
    %c0_i32_1 = arith.constant 0 : i32
    return %c0_i32, %c0_i32_0 : i32, i32
  }
  func.func @transform_8(%arg0: i32) -> (i32, i32) {
    %c0_i32 = arith.constant 0 : i32
    %c0_i32_0 = arith.constant 0 : i32
    %c0_i32_1 = arith.constant 0 : i32
    return %c0_i32, %c0_i32_0 : i32, i32
  }
  func.func @transform_9(%arg0: i32) -> (i32, i32) {
    %c0_i32 = arith.constant 0 : i32
    %c0_i32_0 = arith.constant 0 : i32
    return %c0_i32, %arg0 : i32, i32
  }
}

</mosaic_0001>

<bundles_post_ra>
// kernel: tpu_custom_call.1
= control target key start
LH: loop header
LB: loop body
LE: loop exit
PB: predicated region body
PF: predicated region fallthrough
CT: control target
= control target key end

     0   :  { %s4798_s0 = inlined_call_operand.vmem [shape: f32[2048,12], index: 0, kind: input, shape index: {}]   ;;  %s4799_s1 = inlined_call_operand.vmem [shape: f32[2048,4], index: 1, kind: input, shape index: {}]   ;;  %s4800_s2 = inlined_call_operand.vmem [shape: f32[16,12], index: 2, kind: input, shape index: {}]   ;;  %s4801_s3 = inlined_call_operand.vmem [shape: f32[16,4], index: 3, kind: input, shape index: {}]   ;;  %s4802_s4 = inlined_call_operand.vmem [shape: f32[16,1], index: 4, kind: input, shape index: {}]   ;;  %s4803_s5 = inlined_call_operand.vmem [shape: f32[16,16], index: 5, kind: input, shape index: {}]   ;;  %s4804_s6 = inlined_call_operand.vmem [shape: f32[16,1], index: 6, kind: input, shape index: {}]   ;;  %s4805_s7 = inlined_call_operand.vmem [shape: f32[1,16], index: 7, kind: input, shape index: {}]   ;;  %s4806_s8 = inlined_call_operand.<no memory space> [shape: f32[1,1], index: 8, kind: input, shape index: {}]   ;;  %s4807_s9 = inlined_call_operand.hbm [shape: f32[1,2048], index: 9, kind: output, shape index: {}]  }
   0x1   :  { %v14_v0 = vstv %s4806_s8 }
   0x2   :  { %15 = vst [vmem:[#allocation2] sm:$0x1] %v14_v0 }
   0x3   :  { %16 = vsyncpa [#allocation4], 0 }
   0x4   :  { %18 = vsyncpa [#allocation4 + $0x1], 0  ;;  %s4032_s11 = smov 0   ;;  %s4034_s12 = smov 0  }
   0x5   :  { %s4036_s13 = smov 0   ;;  %s4038_s14 = smov 0  }
   0x6 LB: > { %s2847_s8 = sadd.s32 4294967295, %s3973_s14   ;;  %s2848_s15 = sadd.s32 4294967294, %s3973_s14   ;;  %s3973_s14 = sphi %s4038_s14, %s4817_s14   ;;  %s3969_s13 = sphi %s4036_s13, %s4816_s13   ;;  %s3965_s12 = sphi %s4034_s12, %s4815_s12   ;;  %s3961_s11 = sphi %s4032_s11, %s4814_s11  }
   0x7   : > { %s4055_s16 = sadd.s32 1, %s3973_s14   ;;  %s230_s17 = sadd.s32 1, %s3969_s13 }
   0x8   : > { %s227_s18 = ssub.s32 %s3973_s14, %s4055_s16  ;;  %p240_p0 = scmp.ne.s32.totalorder %s3969_s13, %s3965_s12 }
   0x9   : > { %p228_p1 = scmp.eq.s32.totalorder %s227_s18, 0  ;;  %p241_p2 = scmp.eq.s32.totalorder %s2847_s8, 1 }
   0xa   : > { %p246_p3 = scmp.ne.s32.totalorder %s3965_s12, %s3961_s11  ;;  %p247_p4 = scmp.eq.s32.totalorder %s2848_s15, 1 }
   0xb   : > { %s4065_s19 = scalar_select %p228_p1, %s3969_s13, %s230_s17  }
   0xc   : > { %p4067_p5 = por %p241_p2, %p240_p0  ;;  %p4071_p6 = por %p247_p4, %p246_p3 }
   0xd   : > { %p2851_p7 = scmp.ge.s32.totalorder %s3973_s14, 1  ;;  %p304_p8 = scmp.lt.s32.totalorder %s3973_s14, 3 }
   0xf   : > { %p305_p9 = pnand %p2851_p7, %p304_p8 }
  0x10   : > { %s4077_s22 = sshll.u32 (!%p305_p9), %s2847_s8, 7  ;;  %vm618_vm0 = vcmask (!%p305_p9), 31744   ;;  %v4082_v1 = vld [vmem:[%s4801_s3] sm:$0xff] (!%p305_p9)  ;;  %vm1317_vm2 = vcmask (!%p305_p9), 97280   ;;  %vm2074_vm4 = vcmask (!%p305_p9), 130048   ;;  %s342_s27 = sand.u32 (!%p305_p9), 1, %s3965_s12  }
  0x11   : > { %308 = sbr.rel (%p305_p9) target bundleno = 982 (0x3d6), region = 56  ;;  %p346_p10 = scmp.lt.s32.totalorder (!%p305_p9), %s4077_s22, 255  ;;  %3179 = vmatprep.mubr.msk.f32.mxu0 (!%p305_p9), %vm618_vm0, %v4082_v1  ;;  %3215 = vmatprep.mubr.msk.f32.mxu1 (!%p305_p9), %vm618_vm0, %v4082_v1  ;;  %vm4102_vm1 = vmpackc.low (!%p305_p9), %vm618_vm0, %vm618_vm0 }
  0x12   : > { %vm4392_vm3 = vmpackc.low (!%p305_p9), %vm1317_vm2, %vm1317_vm2  ;;  %s2852_s28 = sshll.u32 (!%p305_p9), %s342_s27, 3  ;;  %s4756_s15 = scalar_lea.hbm (!%p305_p9), %s4807_s9, %s4077_s22 }
  0x13   : > { %s3978_s23 = smov (!%p305_p9), [#allocation3]  }
  0x14   : > { %s3915_s24 = sshll.u32 (!%p305_p9), %s3978_s23, 4  ;;  %s3916_s24 = int_to_ptr.vmem [resolvable:$false] %s3915_s24 }
  0x18   : > { %s4090_s25 = scalar_select %p346_p10, %s4077_s22, 255 }
  0x1a   : > { %s2854_s26 = sshll.u32 %s4090_s25, 3  ;;  %s3917_s25 = scalar_lea.vmem %s3916_s24, 256 }
  0x1b   : > { %s4098_s29 = scalar_lea.vmem %s4799_s1, %s2854_s26  ;;  %s4372_s17 = scalar_lea.vmem %s4798_s0, %s2854_s26 }
  0x1c   : > { %v506_v3 = vld [vmem:[%s4098_s29 + $0x80] sm:$0xff]  ;;  %v507_v4 = vld [vmem:[%s4098_s29 + $0x88] sm:$0xff]  ;;  %v508_v14 = vld [vmem:[%s4098_s29 + $0x90] sm:$0xff] }
  0x1d   : > { %v538_v5 = vld [vmem:[%s4098_s29 + $0x180] sm:$0xff]  ;;  %v3435_v6 = vpack.c.bf16 %v507_v4, %v506_v3  ;;  %v539_v7 = vld [vmem:[%s4098_s29 + $0x188] sm:$0xff]  ;;  %v509_v16 = vld [vmem:[%s4098_s29 + $0x98] sm:$0xff] }
  0x1e   : > { %v490_v8 = vld [vmem:[%s4098_s29] sm:$0xff]  ;;  %v491_v9 = vld [vmem:[%s4098_s29 + $0x8] sm:$0xff]  ;;  %v3483_v10 = vpack.c.bf16 %v539_v7, %v538_v5  ;;  %v540_v17 = vld [vmem:[%s4098_s29 + $0x190] sm:$0xff]  ;;  %v3441_v19 = vpack.c.bf16 %v509_v16, %v508_v14 }
  0x1f   : > { %v3438_v11 = vpack.c.bf16 %v491_v9, %v490_v8  ;;  %v522_v12 = vld [vmem:[%s4098_s29 + $0x100] sm:$0xff]  ;;  %v523_v13 = vld [vmem:[%s4098_s29 + $0x108] sm:$0xff]  ;;  %3437 = vmatprep.subr.msk.bf16.mxu0 %vm4102_vm1, %v3435_v6  ;;  %v541_v18 = vld [vmem:[%s4098_s29 + $0x198] sm:$0xff] }
  0x20   : > { %v3486_v15 = vpack.c.bf16 %v523_v13, %v522_v12  ;;  %3485 = vmatprep.subr.msk.bf16.mxu1 %vm4102_vm1, %v3483_v10  ;;  %v3489_v20 = vpack.c.bf16 %v541_v18, %v540_v17  ;;  %v492_v21 = vld [vmem:[%s4098_s29 + $0x10] sm:$0xff]  ;;  %v493_v22 = vld [vmem:[%s4098_s29 + $0x18] sm:$0xff]  ;;  %v510_v25 = vld [vmem:[%s4098_s29 + $0xa0] sm:$0xff] }
  0x21   : > { %3440 = vmatpush3.bf16.xpose.msk.msra.mxu0 %vm4102_vm1, %v3438_v11  ;;  %v524_v23 = vld [vmem:[%s4098_s29 + $0x110] sm:$0xff]  ;;  %v525_v24 = vld [vmem:[%s4098_s29 + $0x118] sm:$0xff]  ;;  %v511_v26 = vld [vmem:[%s4098_s29 + $0xa8] sm:$0xff]  ;;  %v3444_v29 = vpack.c.bf16 %v493_v22, %v492_v21 }
  0x22   : > { %3488 = vmatpush3.bf16.xpose.msk.msra.mxu1 %vm4102_vm1, %v3486_v15  ;;  %3443 = vmatprep.subr.msk.bf16.mxu0 %vm4102_vm1, %v3441_v19  ;;  %v542_v27 = vld [vmem:[%s4098_s29 + $0x1a0] sm:$0xff]  ;;  %v543_v28 = vld [vmem:[%s4098_s29 + $0x1a8] sm:$0xff]  ;;  %v3492_v30 = vpack.c.bf16 %v525_v24, %v524_v23  ;;  %v3447_v31 = vpack.c.bf16 %v511_v26, %v510_v25  ;;  %v512_v37 = vld [vmem:[%s4098_s29 + $0xb0] sm:$0xff] }
  0x23   : > { %3491 = vmatprep.subr.msk.bf16.mxu1 %vm4102_vm1, %v3489_v20  ;;  %v3495_v32 = vpack.c.bf16 %v543_v28, %v542_v27  ;;  %v494_v33 = vld [vmem:[%s4098_s29 + $0x20] sm:$0xff]  ;;  %v495_v34 = vld [vmem:[%s4098_s29 + $0x28] sm:$0xff]  ;;  %v513_v38 = vld [vmem:[%s4098_s29 + $0xb8] sm:$0xff] }
  0x24   : > { %v526_v35 = vld [vmem:[%s4098_s29 + $0x120] sm:$0xff]  ;;  %v527_v36 = vld [vmem:[%s4098_s29 + $0x128] sm:$0xff]  ;;  %v544_v39 = vld [vmem:[%s4098_s29 + $0x1b0] sm:$0xff]  ;;  %v3450_v41 = vpack.c.bf16 %v495_v34, %v494_v33  ;;  %v3453_v43 = vpack.c.bf16 %v513_v38, %v512_v37 }
  0x25   : > { %v545_v40 = vld [vmem:[%s4098_s29 + $0x1b8] sm:$0xff]  ;;  %v3498_v42 = vpack.c.bf16 %v527_v36, %v526_v35  ;;  %v496_v45 = vld [vmem:[%s4098_s29 + $0x30] sm:$0xff]  ;;  %v514_v49 = vld [vmem:[%s4098_s29 + $0xc0] sm:$0xff] }
  0x26   : > { %v3501_v44 = vpack.c.bf16 %v545_v40, %v544_v39  ;;  %v497_v46 = vld [vmem:[%s4098_s29 + $0x38] sm:$0xff]  ;;  %v528_v47 = vld [vmem:[%s4098_s29 + $0x130] sm:$0xff]  ;;  %v515_v50 = vld [vmem:[%s4098_s29 + $0xc8] sm:$0xff] }
  0x27   : > { %v529_v48 = vld [vmem:[%s4098_s29 + $0x138] sm:$0xff]  ;;  %v546_v51 = vld [vmem:[%s4098_s29 + $0x1c0] sm:$0xff]  ;;  %v547_v52 = vld [vmem:[%s4098_s29 + $0x1c8] sm:$0xff]  ;;  %v3456_v53 = vpack.c.bf16 %v497_v46, %v496_v45  ;;  %v3459_v55 = vpack.c.bf16 %v515_v50, %v514_v49 }
  0x28   : > { %v3504_v54 = vpack.c.bf16 %v529_v48, %v528_v47  ;;  %v3507_v56 = vpack.c.bf16 %v547_v52, %v546_v51  ;;  %v498_v57 = vld [vmem:[%s4098_s29 + $0x40] sm:$0xff]  ;;  %v499_v58 = vld [vmem:[%s4098_s29 + $0x48] sm:$0xff]  ;;  %v516_v61 = vld [vmem:[%s4098_s29 + $0xd0] sm:$0xff] }
  0x29   : > { %3446 = vmatpush3.bf16.xpose.msk.msra.mxu0 %vm4102_vm1, %v3444_v29  ;;  %v530_v59 = vld [vmem:[%s4098_s29 + $0x140] sm:$0xff]  ;;  %v531_v60 = vld [vmem:[%s4098_s29 + $0x148] sm:$0xff]  ;;  %v517_v62 = vld [vmem:[%s4098_s29 + $0xd8] sm:$0xff]  ;;  %v3462_v3 = vpack.c.bf16 %v499_v58, %v498_v57 }
  0x2a   : > { %3494 = vmatpush3.bf16.xpose.msk.msra.mxu1 %vm4102_vm1, %v3492_v30  ;;  %3449 = vmatprep.subr.msk.bf16.mxu0 %vm4102_vm1, %v3447_v31  ;;  %v548_v63 = vld [vmem:[%s4098_s29 + $0x1d0] sm:$0xff]  ;;  %v549_v0 = vld [vmem:[%s4098_s29 + $0x1d8] sm:$0xff]  ;;  %v3510_v4 = vpack.c.bf16 %v531_v60, %v530_v59  ;;  %v3465_v5 = vpack.c.bf16 %v517_v62, %v516_v61  ;;  %v518_v11 = vld [vmem:[%s4098_s29 + $0xe0] sm:$0xff] }
  0x2b   : > { %3497 = vmatprep.subr.msk.bf16.mxu1 %vm4102_vm1, %v3495_v32  ;;  %v3513_v6 = vpack.c.bf16 %v549_v0, %v548_v63  ;;  %v500_v7 = vld [vmem:[%s4098_s29 + $0x50] sm:$0xff]  ;;  %v501_v8 = vld [vmem:[%s4098_s29 + $0x58] sm:$0xff]  ;;  %v519_v12 = vld [vmem:[%s4098_s29 + $0xe8] sm:$0xff] }
  0x2c   : > { %v532_v9 = vld [vmem:[%s4098_s29 + $0x150] sm:$0xff]  ;;  %v533_v10 = vld [vmem:[%s4098_s29 + $0x158] sm:$0xff]  ;;  %v550_v13 = vld [vmem:[%s4098_s29 + $0x1e0] sm:$0xff]  ;;  %v3468_v15 = vpack.c.bf16 %v501_v8, %v500_v7  ;;  %v3471_v17 = vpack.c.bf16 %v519_v12, %v518_v11 }
  0x2d   : > { %v551_v14 = vld [vmem:[%s4098_s29 + $0x1e8] sm:$0xff]  ;;  %v3516_v16 = vpack.c.bf16 %v533_v10, %v532_v9  ;;  %v502_v19 = vld [vmem:[%s4098_s29 + $0x60] sm:$0xff]  ;;  %v520_v23 = vld [vmem:[%s4098_s29 + $0xf0] sm:$0xff] }
  0x2e   : > { %v3519_v18 = vpack.c.bf16 %v551_v14, %v550_v13  ;;  %v503_v20 = vld [vmem:[%s4098_s29 + $0x68] sm:$0xff]  ;;  %v534_v21 = vld [vmem:[%s4098_s29 + $0x160] sm:$0xff]  ;;  %v521_v24 = vld [vmem:[%s4098_s29 + $0xf8] sm:$0xff] }
  0x2f   : > { %v535_v22 = vld [vmem:[%s4098_s29 + $0x168] sm:$0xff]  ;;  %v552_v25 = vld [vmem:[%s4098_s29 + $0x1f0] sm:$0xff]  ;;  %v553_v26 = vld [vmem:[%s4098_s29 + $0x1f8] sm:$0xff]  ;;  %v3474_v27 = vpack.c.bf16 %v503_v20, %v502_v19  ;;  %v3477_v29 = vpack.c.bf16 %v521_v24, %v520_v23 }
  0x30   : > { %v3522_v28 = vpack.c.bf16 %v535_v22, %v534_v21  ;;  %v3525_v30 = vpack.c.bf16 %v553_v26, %v552_v25  ;;  %v504_v31 = vld [vmem:[%s4098_s29 + $0x70] sm:$0xff]  ;;  %v505_v32 = vld [vmem:[%s4098_s29 + $0x78] sm:$0xff]  ;;  %v570_v35 = vld [vmem:[%s4098_s29 + $0x280] sm:$0xff] }
  0x31   : > { %3452 = vmatpush3.bf16.xpose.msk.msra.mxu0 %vm4102_vm1, %v3450_v41  ;;  %v536_v33 = vld [vmem:[%s4098_s29 + $0x170] sm:$0xff]  ;;  %v537_v34 = vld [vmem:[%s4098_s29 + $0x178] sm:$0xff]  ;;  %v571_v36 = vld [vmem:[%s4098_s29 + $0x288] sm:$0xff]  ;;  %v3480_v39 = vpack.c.bf16 %v505_v32, %v504_v31 }
  0x32   : > { %3500 = vmatpush3.bf16.xpose.msk.msra.mxu1 %vm4102_vm1, %v3498_v42  ;;  %3455 = vmatprep.subr.msk.bf16.mxu0 %vm4102_vm1, %v3453_v43  ;;  %v602_v37 = vld [vmem:[%s4098_s29 + $0x380] sm:$0xff]  ;;  %v603_v38 = vld [vmem:[%s4098_s29 + $0x388] sm:$0xff]  ;;  %v3528_v40 = vpack.c.bf16 %v537_v34, %v536_v33  ;;  %v3531_v41 = vpack.c.bf16 %v571_v36, %v570_v35  ;;  %v572_v47 = vld [vmem:[%s4098_s29 + $0x290] sm:$0xff] }
  0x33   : > { %3503 = vmatprep.subr.msk.bf16.mxu1 %vm4102_vm1, %v3501_v44  ;;  %v3579_v42 = vpack.c.bf16 %v603_v38, %v602_v37  ;;  %v554_v43 = vld [vmem:[%s4098_s29 + $0x200] sm:$0xff]  ;;  %v555_v44 = vld [vmem:[%s4098_s29 + $0x208] sm:$0xff]  ;;  %v573_v48 = vld [vmem:[%s4098_s29 + $0x298] sm:$0xff] }
  0x34   : > { %v586_v45 = vld [vmem:[%s4098_s29 + $0x300] sm:$0xff]  ;;  %v587_v46 = vld [vmem:[%s4098_s29 + $0x308] sm:$0xff]  ;;  %v604_v49 = vld [vmem:[%s4098_s29 + $0x390] sm:$0xff]  ;;  %v3534_v51 = vpack.c.bf16 %v555_v44, %v554_v43 }
  0x35   : > { %v605_v50 = vld [vmem:[%s4098_s29 + $0x398] sm:$0xff]  ;;  %v3582_v52 = vpack.c.bf16 %v587_v46, %v586_v45  ;;  %v588_v58 = vld [vmem:[%s4098_s29 + $0x310] sm:$0xff]  ;;  %v574_v60 = vld [vmem:[%s4098_s29 + $0x2a0] sm:$0xff] }
  0x36   : > { %v557_v57 = vld [vmem:[%s4098_s29 + $0x218] sm:$0xff]  ;;  %v575_v61 = vld [vmem:[%s4098_s29 + $0x2a8] sm:$0xff]  ;;  %v606_v62 = vld [vmem:[%s4098_s29 + $0x3a0] sm:$0xff] }
  0x37   : > { %v589_v59 = vld [vmem:[%s4098_s29 + $0x318] sm:$0xff]  ;;  %v607_v63 = vld [vmem:[%s4098_s29 + $0x3a8] sm:$0xff]  ;;  %v590_v8 = vld [vmem:[%s4098_s29 + $0x320] sm:$0xff] }
  0x38   : > { %v559_v7 = vld [vmem:[%s4098_s29 + $0x228] sm:$0xff]  ;;  %v576_v10 = vld [vmem:[%s4098_s29 + $0x2b0] sm:$0xff]  ;;  %v577_v11 = vld [vmem:[%s4098_s29 + $0x2b8] sm:$0xff] }
  0x39   : > { %3458 = vmatpush3.bf16.xpose.msk.msra.mxu0 %vm4102_vm1, %v3456_v53  ;;  %v3537_v53 = vpack.c.bf16 %v573_v48, %v572_v47  ;;  %v591_v9 = vld [vmem:[%s4098_s29 + $0x328] sm:$0xff]  ;;  %v608_v12 = vld [vmem:[%s4098_s29 + $0x3b0] sm:$0xff]  ;;  %v609_v13 = vld [vmem:[%s4098_s29 + $0x3b8] sm:$0xff] }
  0x3a   : > { %3506 = vmatpush3.bf16.xpose.msk.msra.mxu1 %vm4102_vm1, %v3504_v54  ;;  %3461 = vmatprep.subr.msk.bf16.mxu0 %vm4102_vm1, %v3459_v55  ;;  %v3585_v54 = vpack.c.bf16 %v605_v50, %v604_v49  ;;  %v4255_v55 = vld [vmem:[%s4801_s3 + $0x8] sm:$0xff]  ;;  %v561_v19 = vld [vmem:[%s4098_s29 + $0x238] sm:$0xff]  ;;  %v592_v20 = vld [vmem:[%s4098_s29 + $0x330] sm:$0xff] }
  0x3b   : > { %3509 = vmatprep.subr.msk.bf16.mxu1 %vm4102_vm1, %v3507_v56  ;;  %v556_v56 = vld [vmem:[%s4098_s29 + $0x210] sm:$0xff]  ;;  %v593_v21 = vld [vmem:[%s4098_s29 + $0x338] sm:$0xff]  ;;  %v578_v22 = vld [vmem:[%s4098_s29 + $0x2c0] sm:$0xff] }
  0x3c   : > { %v3540_v0 = vpack.c.bf16 %v557_v57, %v556_v56  ;;  %v579_v23 = vld [vmem:[%s4098_s29 + $0x2c8] sm:$0xff]  ;;  %v610_v24 = vld [vmem:[%s4098_s29 + $0x3c0] sm:$0xff]  ;;  %v580_v34 = vld [vmem:[%s4098_s29 + $0x2d0] sm:$0xff] }
  0x3d   : > { %v611_v25 = vld [vmem:[%s4098_s29 + $0x3c8] sm:$0xff]  ;;  %v594_v32 = vld [vmem:[%s4098_s29 + $0x340] sm:$0xff]  ;;  %v581_v35 = vld [vmem:[%s4098_s29 + $0x2d8] sm:$0xff] }
  0x3e   : > { %v563_v31 = vld [vmem:[%s4098_s29 + $0x248] sm:$0xff]  ;;  %v612_v36 = vld [vmem:[%s4098_s29 + $0x3d0] sm:$0xff]  ;;  %v613_v37 = vld [vmem:[%s4098_s29 + $0x3d8] sm:$0xff] }
  0x3f   : > { %v595_v33 = vld [vmem:[%s4098_s29 + $0x348] sm:$0xff]  ;;  %v565_v43 = vld [vmem:[%s4098_s29 + $0x258] sm:$0xff]  ;;  %v596_v44 = vld [vmem:[%s4098_s29 + $0x350] sm:$0xff] }
  0x40   : > { %v597_v45 = vld [vmem:[%s4098_s29 + $0x358] sm:$0xff]  ;;  %v582_v46 = vld [vmem:[%s4098_s29 + $0x2e0] sm:$0xff]  ;;  %v583_v47 = vld [vmem:[%s4098_s29 + $0x2e8] sm:$0xff] }
  0x41   : > { %3464 = vmatpush3.bf16.xpose.msk.msra.mxu0 %vm4102_vm1, %v3462_v3  ;;  %v3588_v3 = vpack.c.bf16 %v589_v59, %v588_v58  ;;  %v614_v48 = vld [vmem:[%s4098_s29 + $0x3e0] sm:$0xff]  ;;  %v615_v49 = vld [vmem:[%s4098_s29 + $0x3e8] sm:$0xff]  ;;  %v584_v59 = vld [vmem:[%s4098_s29 + $0x2f0] sm:$0xff] }
  0x42   : > { %3512 = vmatpush3.bf16.xpose.msk.msra.mxu1 %vm4102_vm1, %v3510_v4  ;;  %3467 = vmatprep.subr.msk.bf16.mxu0 %vm4102_vm1, %v3465_v5  ;;  %v3543_v4 = vpack.c.bf16 %v575_v61, %v574_v60  ;;  %v3591_v5 = vpack.c.bf16 %v607_v63, %v606_v62  ;;  %v567_v56 = vld [vmem:[%s4098_s29 + $0x268] sm:$0xff]  ;;  %v598_v57 = vld [vmem:[%s4098_s29 + $0x360] sm:$0xff]  ;;  %v585_v60 = vld [vmem:[%s4098_s29 + $0x2f8] sm:$0xff] }
  0x43   : > { %3515 = vmatprep.subr.msk.bf16.mxu1 %vm4102_vm1, %v3513_v6  ;;  %v558_v6 = vld [vmem:[%s4098_s29 + $0x220] sm:$0xff]  ;;  %v599_v58 = vld [vmem:[%s4098_s29 + $0x368] sm:$0xff]  ;;  %v616_v61 = vld [vmem:[%s4098_s29 + $0x3f0] sm:$0xff] }
  0x44   : > { %v3546_v14 = vpack.c.bf16 %v559_v7, %v558_v6  ;;  %v617_v62 = vld [vmem:[%s4098_s29 + $0x3f8] sm:$0xff]  ;;  %v600_v7 = vld [vmem:[%s4098_s29 + $0x370] sm:$0xff] }
  0x45   : > { %v569_v6 = vld [vmem:[%s4098_s29 + $0x278] sm:$0xff] }
  0x49   : > { %3470 = vmatpush3.bf16.xpose.msk.msra.mxu0 %vm4102_vm1, %v3468_v15  ;;  %v3594_v15 = vpack.c.bf16 %v591_v9, %v590_v8  ;;  %v601_v8 = vld [vmem:[%s4098_s29 + $0x378] sm:$0xff]  ;;  %v376_v9 = vld [vmem:[%s4372_s17 + $0x80] sm:$0xff] }
  0x4a   : > { %3518 = vmatpush3.bf16.xpose.msk.msra.mxu1 %vm4102_vm1, %v3516_v16  ;;  %3473 = vmatprep.subr.msk.bf16.mxu0 %vm4102_vm1, %v3471_v17  ;;  %v3549_v16 = vpack.c.bf16 %v577_v11, %v576_v10  ;;  %v3597_v17 = vpack.c.bf16 %v609_v13, %v608_v12  ;;  %v377_v10 = vld [vmem:[%s4372_s17 + $0x88] sm:$0xff]  ;;  %v408_v11 = vld [vmem:[%s4372_s17 + $0x180] sm:$0xff] }
  0x4b   : > { %3521 = vmatprep.subr.msk.bf16.mxu1 %vm4102_vm1, %v3519_v18  ;;  %v560_v18 = vld [vmem:[%s4098_s29 + $0x230] sm:$0xff]  ;;  %v409_v12 = vld [vmem:[%s4372_s17 + $0x188] sm:$0xff] }
  0x4c   : > { %v3552_v26 = vpack.c.bf16 %v561_v19, %v560_v18  ;;  %v360_v18 = vld [vmem:[%s4372_s17] sm:$0xff]  ;;  %v361_v19 = vld [vmem:[%s4372_s17 + $0x8] sm:$0xff] }
  0x4d   : > { %v3630_v2 = vpack.c.bf16 %v361_v19, %v360_v18 }
  0x51   : > { %3476 = vmatpush3.bf16.xpose.msk.msra.mxu0 %vm4102_vm1, %v3474_v27  ;;  %v3600_v27 = vpack.c.bf16 %v593_v21, %v592_v20  ;;  %v392_v20 = vld [vmem:[%s4372_s17 + $0x100] sm:$0xff]  ;;  %v393_v21 = vld [vmem:[%s4372_s17 + $0x108] sm:$0xff] }
  0x52   : > { %3524 = vmatpush3.bf16.xpose.msk.msra.mxu1 %vm4102_vm1, %v3522_v28  ;;  %3479 = vmatprep.subr.msk.bf16.mxu0 %vm4102_vm1, %v3477_v29  ;;  %v3555_v28 = vpack.c.bf16 %v579_v23, %v578_v22  ;;  %v3603_v29 = vpack.c.bf16 %v611_v25, %v610_v24  ;;  %v378_v22 = vld [vmem:[%s4372_s17 + $0x90] sm:$0xff]  ;;  %v379_v23 = vld [vmem:[%s4372_s17 + $0x98] sm:$0xff] }
  0x53   : > { %3527 = vmatprep.subr.msk.bf16.mxu1 %vm4102_vm1, %v3525_v30  ;;  %v562_v30 = vld [vmem:[%s4098_s29 + $0x240] sm:$0xff]  ;;  %v410_v24 = vld [vmem:[%s4372_s17 + $0x190] sm:$0xff]  ;;  %v411_v25 = vld [vmem:[%s4372_s17 + $0x198] sm:$0xff] }
  0x54   : > { %v3558_v38 = vpack.c.bf16 %v563_v31, %v562_v30  ;;  %v363_v30 = vld [vmem:[%s4372_s17 + $0x18] sm:$0xff]  ;;  %v394_v31 = vld [vmem:[%s4372_s17 + $0x110] sm:$0xff] }
  0x59   : > { %3482 = vmatpush3.bf16.xpose.msk.msra.mxu0 %vm4102_vm1, %v3480_v39  ;;  %v3606_v39 = vpack.c.bf16 %v595_v33, %v594_v32  ;;  %v4428_v32 = vld [vmem:[%s4800_s2] sm:$0xff] }
  0x5a   : > { %3530 = vmatpush3.bf16.xpose.msk.msra.mxu1 %vm4102_vm1, %v3528_v40  ;;  %3533 = vmatprep.subr.msk.bf16.mxu0 %vm4102_vm1, %v3531_v41  ;;  %v3561_v40 = vpack.c.bf16 %v581_v35, %v580_v34  ;;  %v3609_v41 = vpack.c.bf16 %v613_v37, %v612_v36  ;;  %v380_v33 = vld [vmem:[%s4372_s17 + $0xa0] sm:$0xff]  ;;  %v381_v34 = vld [vmem:[%s4372_s17 + $0xa8] sm:$0xff] }
  0x5b   : > { %3581 = vmatprep.subr.msk.bf16.mxu1 %vm4102_vm1, %v3579_v42  ;;  %v564_v42 = vld [vmem:[%s4098_s29 + $0x250] sm:$0xff]  ;;  %v412_v35 = vld [vmem:[%s4372_s17 + $0x1a0] sm:$0xff]  ;;  %v413_v36 = vld [vmem:[%s4372_s17 + $0x1a8] sm:$0xff] }
  0x5c   : > { %v3564_v50 = vpack.c.bf16 %v565_v43, %v564_v42  ;;  %v2017_v42 = vld [vmem:[%s4802_s4 + $0x8] sm:$0xff]  ;;  %v364_v43 = vld [vmem:[%s4372_s17 + $0x20] sm:$0xff] }
  0x60   : > { %3180 = vmatmul.mubr.msk.f32.vlgmr.msra.gmra.mrb[0].mxu0 %vm618_vm0, %v4082_v1 }
  0x61   : > { %3216 = vmatmul.mubr.msk.f32.vlgmr.msra.gmra.mrb[0].mxu1 %vm618_vm0, %v4082_v1  ;;  %3536 = vmatpush3.bf16.xpose.msk.msra.mxu0 %vm4102_vm1, %v3534_v51  ;;  %v3612_v51 = vpack.c.bf16 %v597_v45, %v596_v44  ;;  %v365_v44 = vld [vmem:[%s4372_s17 + $0x28] sm:$0xff]  ;;  %v396_v45 = vld [vmem:[%s4372_s17 + $0x120] sm:$0xff] }
  0x62   : > { %3584 = vmatpush3.bf16.xpose.msk.msra.mxu1 %vm4102_vm1, %v3582_v52  ;;  %3539 = vmatprep.subr.msk.bf16.mxu0 %vm4102_vm1, %v3537_v53  ;;  %v3567_v52 = vpack.c.bf16 %v583_v47, %v582_v46  ;;  %v3615_v53 = vpack.c.bf16 %v615_v49, %v614_v48  ;;  %v397_v46 = vld [vmem:[%s4372_s17 + $0x128] sm:$0xff]  ;;  %v382_v47 = vld [vmem:[%s4372_s17 + $0xb0] sm:$0xff]  ;;  %v383_v48 = vld [vmem:[%s4372_s17 + $0xb8] sm:$0xff] }
  0x63   : > { %3587 = vmatprep.subr.msk.bf16.mxu1 %vm4102_vm1, %v3585_v54  ;;  %3181 = vmatprep.mubr.msk.f32.mxu0 %vm618_vm0, %v4255_v55  ;;  %v566_v54 = vld [vmem:[%s4098_s29 + $0x260] sm:$0xff]  ;;  %v414_v49 = vld [vmem:[%s4372_s17 + $0x1b0] sm:$0xff] }
  0x64   : > { %3217 = vmatprep.mubr.msk.f32.mxu1 %vm618_vm0, %v4255_v55  ;;  %3182 = vmatmul.mubr.msk.f32.gmra.mrb[2].mxu0 %vm618_vm0, %v4255_v55  ;;  %v3570_v63 = vpack.c.bf16 %v567_v56, %v566_v54  ;;  %v3645_v54 = vpack.c.bf16 %v383_v48, %v382_v47  ;;  %v441_v47 = vld [vmem:[%s4372_s17 + $0x288] sm:$0xff]  ;;  %v472_v48 = vld [vmem:[%s4372_s17 + $0x380] sm:$0xff] }
  0x65   : > { %3218 = vmatmul.mubr.msk.f32.gmra.mrb[2].mxu1 %vm618_vm0, %v4255_v55  ;;  %3251 = vmatprep.mubr.msk.f32.mxu0 %vm618_vm0, %v4082_v1 }
  0x66   : > { %3287 = vmatprep.mubr.msk.f32.mxu1 %vm618_vm0, %v4082_v1 }
  0x69   : > { %3542 = vmatpush3.bf16.xpose.msk.msra.mxu0 %vm4102_vm1, %v3540_v0  ;;  %v3618_v0 = vpack.c.bf16 %v599_v58, %v598_v57  ;;  %v366_v57 = vld [vmem:[%s4372_s17 + $0x30] sm:$0xff]  ;;  %v367_v58 = vld [vmem:[%s4372_s17 + $0x38] sm:$0xff] }
  0x6a   : > { %3590 = vmatpush3.bf16.xpose.msk.msra.mxu1 %vm4102_vm1, %v3588_v3  ;;  %3545 = vmatprep.subr.msk.bf16.mxu0 %vm4102_vm1, %v3543_v4  ;;  %v3573_v3 = vpack.c.bf16 %v585_v60, %v584_v59  ;;  %v3621_v4 = vpack.c.bf16 %v617_v62, %v616_v61  ;;  %v398_v59 = vld [vmem:[%s4372_s17 + $0x130] sm:$0xff]  ;;  %v399_v60 = vld [vmem:[%s4372_s17 + $0x138] sm:$0xff]  ;;  %v384_v61 = vld [vmem:[%s4372_s17 + $0xc0] sm:$0xff] }
  0x6b   : > { %3593 = vmatprep.subr.msk.bf16.mxu1 %vm4102_vm1, %v3591_v5  ;;  %v568_v5 = vld [vmem:[%s4098_s29 + $0x270] sm:$0xff]  ;;  %v385_v62 = vld [vmem:[%s4372_s17 + $0xc8] sm:$0xff]  ;;  %s344_s29 = scalar_lea.vmem [#allocation3], %s2852_s28 }
  0x6c   : > { %v3576_v13 = vpack.c.bf16 %v569_v6, %v568_v5  ;;  %v3651_v5 = vpack.c.bf16 %v385_v62, %v384_v61  ;;  %v474_v62 = vld [vmem:[%s4372_s17 + $0x390] sm:$0xff]  ;;  %s2777_s30 = sshll.u32 %s344_s29, 4  ;;  %s4758_s30 = int_to_ptr.vmem [resolvable:$true] %s2777_s30 }
  0x6d   : > { %s3911_s18 = scalar_lea.vmem %s4758_s30, 128  ;;  %p3918_p0 = scmp.lt.s32.totalorder %s4758_s30, %s3916_s24 }
  0x6e   : > { %p3912_p11 = scmp.ne.s32.totalorder %s4758_s30, %s3911_s18  ;;  %p3919_p1 = scmp.lt.s32.totalorder %s3917_s25, %s3911_s18 }
  0x70   : > { %p3913_p12 = pnand %p3912_p11, %p4067_p5  ;;  %p3920_p2 = por %p3919_p1, %p3918_p0 }
  0x71   : > { %3548 = vmatpush3.bf16.xpose.msk.msra.mxu0 %vm4102_vm1, %v3546_v14  ;;  %v3624_v14 = vpack.c.bf16 %v601_v8, %v600_v7  ;;  %v368_v7 = vld [vmem:[%s4372_s17 + $0x40] sm:$0xff]  ;;  %v369_v8 = vld [vmem:[%s4372_s17 + $0x48] sm:$0xff] }
  0x72   : > { %3596 = vmatpush3.bf16.xpose.msk.msra.mxu1 %vm4102_vm1, %v3594_v15  ;;  %3551 = vmatprep.subr.msk.bf16.mxu0 %vm4102_vm1, %v3549_v16  ;;  %v3627_v15 = vpack.c.bf16 %v377_v10, %v376_v9  ;;  %v400_v9 = vld [vmem:[%s4372_s17 + $0x140] sm:$0xff]  ;;  %v401_v10 = vld [vmem:[%s4372_s17 + $0x148] sm:$0xff]  ;;  %v3976_v16 = vmov 0.0   ;;  %p3914_p13 = pneg %p3913_p12 }
  0x73   : > { %3599 = vmatprep.subr.msk.bf16.mxu1 %vm4102_vm1, %v3597_v17  ;;  %v3675_v17 = vpack.c.bf16 %v409_v12, %v408_v11  ;;  %v386_v11 = vld [vmem:[%s4372_s17 + $0xd0] sm:$0xff]  ;;  %v387_v12 = vld [vmem:[%s4372_s17 + $0xd8] sm:$0xff] }
  0x74   : > { %v3657_v18 = vpack.c.bf16 %v387_v12, %v386_v11  ;;  %v445_v11 = vld [vmem:[%s4372_s17 + $0x2a8] sm:$0xff]  ;;  %v476_v12 = vld [vmem:[%s4372_s17 + $0x3a0] sm:$0xff]  ;;  %p3921_p3 = pnand %p3920_p2, %p3914_p13 }
  0x79   : > { %3554 = vmatpush3.bf16.xpose.msk.msra.mxu0 %vm4102_vm1, %v3552_v26  ;;  %v3678_v26 = vpack.c.bf16 %v393_v21, %v392_v20  ;;  %v370_v20 = vld [vmem:[%s4372_s17 + $0x50] sm:$0xff]  ;;  %v371_v21 = vld [vmem:[%s4372_s17 + $0x58] sm:$0xff] }
  0x7a   : > { %3602 = vmatpush3.bf16.xpose.msk.msra.mxu1 %vm4102_vm1, %v3600_v27  ;;  %3557 = vmatprep.subr.msk.bf16.mxu0 %vm4102_vm1, %v3555_v28  ;;  %v3633_v27 = vpack.c.bf16 %v379_v23, %v378_v22  ;;  %v3681_v28 = vpack.c.bf16 %v411_v25, %v410_v24  ;;  %v402_v22 = vld [vmem:[%s4372_s17 + $0x150] sm:$0xff]  ;;  %v403_v23 = vld [vmem:[%s4372_s17 + $0x158] sm:$0xff]  ;;  %v388_v24 = vld [vmem:[%s4372_s17 + $0xe0] sm:$0xff] }
  0x7b   : > { %3605 = vmatprep.subr.msk.bf16.mxu1 %vm4102_vm1, %v3603_v29  ;;  %v362_v29 = vld [vmem:[%s4372_s17 + $0x10] sm:$0xff]  ;;  %v389_v25 = vld [vmem:[%s4372_s17 + $0xe8] sm:$0xff] }
  0x7c   : > { %v3636_v37 = vpack.c.bf16 %v363_v30, %v362_v29  ;;  %v3663_v29 = vpack.c.bf16 %v389_v25, %v388_v24  ;;  %v447_v24 = vld [vmem:[%s4372_s17 + $0x2b8] sm:$0xff]  ;;  %v478_v25 = vld [vmem:[%s4372_s17 + $0x3b0] sm:$0xff] }
  0x81   : > { %3560 = vmatpush3.bf16.xpose.msk.msra.mxu0 %vm4102_vm1, %v3558_v38  ;;  %v2016_v38 = vld [vmem:[%s4802_s4] sm:$0xff] }
  0x82   : > { %3608 = vmatpush3.bf16.xpose.msk.msra.mxu1 %vm4102_vm1, %v3606_v39  ;;  %3563 = vmatprep.subr.msk.bf16.mxu0 %vm4102_vm1, %v3561_v40  ;;  %v3639_v40 = vpack.c.bf16 %v381_v34, %v380_v33  ;;  %v404_v33 = vld [vmem:[%s4372_s17 + $0x160] sm:$0xff]  ;;  %v405_v34 = vld [vmem:[%s4372_s17 + $0x168] sm:$0xff] }
  0x83   : > { %3611 = vmatprep.subr.msk.bf16.mxu1 %vm4102_vm1, %v3609_v41  ;;  %v3975_v41 = vmov 0  }
  0x84   : > { %3909 = vset.pattern.permute.xlu0 %v3975_v41  ;;  %3910 = vset.pattern.permute.xlu1 %v3975_v41 }
  0x85   : > { %2020 = vperm.xlu0 %3909, %v2016_v38   ;;  %v423_v38 = vld [vmem:[%s4372_s17 + $0x1f8] sm:$0xff] }
  0x89   : > { %3566 = vmatpush3.bf16.xpose.msk.msra.mxu0 %vm4102_vm1, %v3564_v50  ;;  %2025 = vperm.xlu0 %3909, %v2017_v42   ;;  %v415_v50 = vld [vmem:[%s4372_s17 + $0x1b8] sm:$0xff]  ;;  %v374_v42 = vld [vmem:[%s4372_s17 + $0x70] sm:$0xff] }
  0x8a   : > { %3614 = vmatpush3.bf16.xpose.msk.msra.mxu1 %vm4102_vm1, %v3612_v51  ;;  %3569 = vmatprep.subr.msk.bf16.mxu0 %vm4102_vm1, %v3567_v52  ;;  %v2406_v51 = vld [vmem:[#allocation2] sm:$0x1]  ;;  %v3642_v52 = vpack.c.bf16 %v365_v44, %v364_v43  ;;  %v3693_v56 = vpack.c.bf16 %v415_v50, %v414_v49  ;;  %v375_v43 = vld [vmem:[%s4372_s17 + $0x78] sm:$0xff]  ;;  %v406_v44 = vld [vmem:[%s4372_s17 + $0x170] sm:$0xff] }
  0x8b   : > { %3617 = vmatprep.subr.msk.bf16.mxu1 %vm4102_vm1, %v3615_v53  ;;  %v3690_v53 = vpack.c.bf16 %v397_v46, %v396_v45  ;;  %v407_v45 = vld [vmem:[%s4372_s17 + $0x178] sm:$0xff]  ;;  %v440_v46 = vld [vmem:[%s4372_s17 + $0x280] sm:$0xff]  ;;  %v473_v49 = vld [vmem:[%s4372_s17 + $0x388] sm:$0xff]  ;;  %v3672_v50 = vpack.c.bf16 %v375_v43, %v374_v42 }
  0x8c   : > { %v433_v42 = vld [vmem:[%s4372_s17 + $0x248] sm:$0xff]  ;;  %v464_v43 = vld [vmem:[%s4372_s17 + $0x340] sm:$0xff] }
  0x8d   : > { %2409 = vperm.xlu0 %3909, %v2406_v51   ;;  %v3720_v51 = vpack.c.bf16 %v407_v45, %v406_v44  ;;  %v465_v44 = vld [vmem:[%s4372_s17 + $0x348] sm:$0xff]  ;;  %v450_v45 = vld [vmem:[%s4372_s17 + $0x2d0] sm:$0xff] }
  0x91   : > { %3572 = vmatpush3.bf16.xpose.msk.msra.mxu0 %vm4102_vm1, %v3570_v63  ;;  %v416_v63 = vld [vmem:[%s4372_s17 + $0x1c0] sm:$0xff] }
  0x92   : > { %3620 = vmatpush3.bf16.xpose.msk.msra.mxu1 %vm4102_vm1, %v3618_v0  ;;  %3575 = vmatprep.subr.msk.bf16.mxu0 %vm4102_vm1, %v3573_v3  ;;  %v417_v0 = vld [vmem:[%s4372_s17 + $0x1c8] sm:$0xff]  ;;  %v3648_v3 = vpack.c.bf16 %v367_v58, %v366_v57  ;;  %v456_v57 = vld [vmem:[%s4372_s17 + $0x300] sm:$0xff] }
  0x93   : > { %3623 = vmatprep.subr.msk.bf16.mxu1 %vm4102_vm1, %v3621_v4  ;;  %v3696_v4 = vpack.c.bf16 %v399_v60, %v398_v59  ;;  %v3699_v6 = vpack.c.bf16 %v417_v0, %v416_v63  ;;  %v457_v58 = vld [vmem:[%s4372_s17 + $0x308] sm:$0xff]  ;;  %v442_v59 = vld [vmem:[%s4372_s17 + $0x290] sm:$0xff]  ;;  %v443_v60 = vld [vmem:[%s4372_s17 + $0x298] sm:$0xff] }
  0x94   : > { %v475_v63 = vld [vmem:[%s4372_s17 + $0x398] sm:$0xff]  ;;  %v3774_v0 = vpack.c.bf16 %v457_v58, %v456_v57  ;;  %v452_v58 = vld [vmem:[%s4372_s17 + $0x2e0] sm:$0xff] }
  0x95   : > { %v467_v57 = vld [vmem:[%s4372_s17 + $0x358] sm:$0xff] }
  0x99   : > { %3578 = vmatpush3.bf16.xpose.msk.msra.mxu0 %vm4102_vm1, %v3576_v13  ;;  %v418_v13 = vld [vmem:[%s4372_s17 + $0x1d0] sm:$0xff] }
  0x9a   : > { %3626 = vmatpush3.bf16.xpose.msk.msra.mxu1 %vm4102_vm1, %v3624_v14  ;;  %3629 = vmatprep.subr.msk.bf16.mxu0 %vm4392_vm3, %v3627_v15  ;;  %v419_v14 = vld [vmem:[%s4372_s17 + $0x1d8] sm:$0xff]  ;;  %v3654_v15 = vpack.c.bf16 %v369_v8, %v368_v7  ;;  %v458_v8 = vld [vmem:[%s4372_s17 + $0x310] sm:$0xff] }
  0x9b   : > { %3677 = vmatprep.subr.msk.bf16.mxu1 %vm4392_vm3, %v3675_v17  ;;  %v3702_v17 = vpack.c.bf16 %v401_v10, %v400_v9  ;;  %v3705_v19 = vpack.c.bf16 %v419_v14, %v418_v13  ;;  %v427_v7 = vld [vmem:[%s4372_s17 + $0x218] sm:$0xff]  ;;  %v444_v10 = vld [vmem:[%s4372_s17 + $0x2a0] sm:$0xff]  ;;  %v477_v13 = vld [vmem:[%s4372_s17 + $0x3a8] sm:$0xff] }
  0x9c   : > { %v459_v9 = vld [vmem:[%s4372_s17 + $0x318] sm:$0xff] }
  0xa0   : > { %3252 = vmatmul.mubr.msk.f32.vlgmr.msra.gmra.mrb[4].mxu0 %vm618_vm0, %v4082_v1 }
  0xa1   : > { %3288 = vmatmul.mubr.msk.f32.vlgmr.msra.gmra.mrb[4].mxu1 %vm618_vm0, %v4082_v1  ;;  %3632 = vmatpush3.bf16.xpose.msk.msra.mxu0 %vm4392_vm3, %v3630_v2  ;;  %v395_v1 = vld [vmem:[%s4372_s17 + $0x118] sm:$0xff]  ;;  %v420_v2 = vld [vmem:[%s4372_s17 + $0x1e0] sm:$0xff] }
  0xa2   : > { %3680 = vmatpush3.bf16.xpose.msk.msra.mxu1 %vm4392_vm3, %v3678_v26  ;;  %3635 = vmatprep.subr.msk.bf16.mxu0 %vm4392_vm3, %v3633_v27  ;;  %v3684_v39 = vpack.c.bf16 %v395_v1, %v394_v31  ;;  %v421_v26 = vld [vmem:[%s4372_s17 + $0x1e8] sm:$0xff]  ;;  %v3660_v27 = vpack.c.bf16 %v371_v21, %v370_v20  ;;  %v372_v31 = vld [vmem:[%s4372_s17 + $0x60] sm:$0xff] }
  0xa3   : > { %3683 = vmatprep.subr.msk.bf16.mxu1 %vm4392_vm3, %v3681_v28  ;;  %3253 = vmatprep.mubr.msk.f32.mxu0 %vm618_vm0, %v4255_v55  ;;  %v3708_v28 = vpack.c.bf16 %v403_v23, %v402_v22  ;;  %v3711_v30 = vpack.c.bf16 %v421_v26, %v420_v2  ;;  %v373_v1 = vld [vmem:[%s4372_s17 + $0x68] sm:$0xff]  ;;  %v460_v21 = vld [vmem:[%s4372_s17 + $0x320] sm:$0xff]  ;;  %v446_v23 = vld [vmem:[%s4372_s17 + $0x2b0] sm:$0xff] }
  0xa4   : > { %3289 = vmatprep.mubr.msk.f32.mxu1 %vm618_vm0, %v4255_v55  ;;  %3254 = vmatmul.mubr.msk.f32.gmra.mrb[6].mxu0 %vm618_vm0, %v4255_v55  ;;  %v429_v20 = vld [vmem:[%s4372_s17 + $0x228] sm:$0xff]  ;;  %v479_v2 = vld [vmem:[%s4372_s17 + $0x3b8] sm:$0xff] }
  0xa5   : > { %3290 = vmatmul.mubr.msk.f32.gmra.mrb[6].mxu1 %vm618_vm0, %v4255_v55  ;;  %3323 = vmatprep.mubr.msk.f32.mxu0 %vm1317_vm2, %v4428_v32  ;;  %v3687_v55 = vpack.c.bf16 %v413_v36, %v412_v35  ;;  %v390_v35 = vld [vmem:[%s4372_s17 + $0xf0] sm:$0xff]  ;;  %v391_v36 = vld [vmem:[%s4372_s17 + $0xf8] sm:$0xff]  ;;  %v461_v22 = vld [vmem:[%s4372_s17 + $0x328] sm:$0xff] }
  0xa6   : > { %3359 = vmatprep.mubr.msk.f32.mxu1 %vm1317_vm2, %v4428_v32  ;;  %v3669_v41 = vpack.c.bf16 %v391_v36, %v390_v35  ;;  %v449_v35 = vld [vmem:[%s4372_s17 + $0x2c8] sm:$0xff]  ;;  %v480_v36 = vld [vmem:[%s4372_s17 + $0x3c0] sm:$0xff] }
  0xa9   : > { %3638 = vmatpush3.bf16.xpose.msk.msra.mxu0 %vm4392_vm3, %v3636_v37  ;;  %v422_v37 = vld [vmem:[%s4372_s17 + $0x1f0] sm:$0xff] }
  0xaa   : > { %3686 = vmatpush3.bf16.xpose.msk.msra.mxu1 %vm4392_vm3, %v3684_v39  ;;  %3641 = vmatprep.subr.msk.bf16.mxu0 %vm4392_vm3, %v3639_v40  ;;  %v3666_v39 = vpack.c.bf16 %v373_v1, %v372_v31  ;;  %v3714_v40 = vpack.c.bf16 %v405_v34, %v404_v33  ;;  %v431_v31 = vld [vmem:[%s4372_s17 + $0x238] sm:$0xff]  ;;  %v462_v1 = vld [vmem:[%s4372_s17 + $0x330] sm:$0xff]  ;;  %v448_v34 = vld [vmem:[%s4372_s17 + $0x2c0] sm:$0xff] }
  0xab   : > { %3689 = vmatprep.subr.msk.bf16.mxu1 %vm4392_vm3, %v3687_v55  ;;  %v3717_v55 = vpack.c.bf16 %v423_v38, %v422_v37  ;;  %v463_v33 = vld [vmem:[%s4372_s17 + $0x338] sm:$0xff]  ;;  %v481_v37 = vld [vmem:[%s4372_s17 + $0x3c8] sm:$0xff] }
  0xb1   : > { %3644 = vmatpush3.bf16.xpose.msk.msra.mxu0 %vm4392_vm3, %v3642_v52  ;;  %v3723_v52 = vpack.c.bf16 %v441_v47, %v440_v46  ;;  %v451_v46 = vld [vmem:[%s4372_s17 + $0x2d8] sm:$0xff]  ;;  %v482_v47 = vld [vmem:[%s4372_s17 + $0x3d0] sm:$0xff] }
  0xb2   : > { %3692 = vmatpush3.bf16.xpose.msk.msra.mxu1 %vm4392_vm3, %v3690_v53  ;;  %3647 = vmatprep.subr.msk.bf16.mxu0 %vm4392_vm3, %v3645_v54  ;;  %v3771_v53 = vpack.c.bf16 %v473_v49, %v472_v48  ;;  %v424_v54 = vld [vmem:[%s4372_s17 + $0x200] sm:$0xff]  ;;  %v483_v48 = vld [vmem:[%s4372_s17 + $0x3d8] sm:$0xff] }
  0xb3   : > { %3695 = vmatprep.subr.msk.bf16.mxu1 %vm4392_vm3, %v3693_v56  ;;  %v425_v56 = vld [vmem:[%s4372_s17 + $0x208] sm:$0xff] }
  0xb4   : > { %v3726_v61 = vpack.c.bf16 %v425_v56, %v424_v54  ;;  %v435_v54 = vld [vmem:[%s4372_s17 + $0x258] sm:$0xff]  ;;  %v466_v56 = vld [vmem:[%s4372_s17 + $0x350] sm:$0xff] }
  0xb9   : > { %3650 = vmatpush3.bf16.xpose.msk.msra.mxu0 %vm4392_vm3, %v3648_v3  ;;  %v4570_v3 = vld [vmem:[%s4800_s2 + $0x8] sm:$0xff] }
  0xba   : > { %3698 = vmatpush3.bf16.xpose.msk.msra.mxu1 %vm4392_vm3, %v3696_v4  ;;  %3653 = vmatprep.subr.msk.bf16.mxu0 %vm4392_vm3, %v3651_v5  ;;  %v3729_v4 = vpack.c.bf16 %v443_v60, %v442_v59  ;;  %v3777_v5 = vpack.c.bf16 %v475_v63, %v474_v62  ;;  %v453_v59 = vld [vmem:[%s4372_s17 + $0x2e8] sm:$0xff]  ;;  %v484_v60 = vld [vmem:[%s4372_s17 + $0x3e0] sm:$0xff]  ;;  %v3804_v63 = vpack.c.bf16 %v467_v57, %v466_v56 }
  0xbb   : > { %3701 = vmatprep.subr.msk.bf16.mxu1 %vm4392_vm3, %v3699_v6  ;;  %v426_v6 = vld [vmem:[%s4372_s17 + $0x210] sm:$0xff] }
  0xbc   : > { %v3732_v14 = vpack.c.bf16 %v427_v7, %v426_v6  ;;  %v437_v6 = vld [vmem:[%s4372_s17 + $0x268] sm:$0xff]  ;;  %v468_v7 = vld [vmem:[%s4372_s17 + $0x360] sm:$0xff] }
  0xc1   : > { %3656 = vmatpush3.bf16.xpose.msk.msra.mxu0 %vm4392_vm3, %v3654_v15  ;;  %v3780_v15 = vpack.c.bf16 %v459_v9, %v458_v8  ;;  %v469_v8 = vld [vmem:[%s4372_s17 + $0x368] sm:$0xff]  ;;  %v454_v9 = vld [vmem:[%s4372_s17 + $0x2f0] sm:$0xff] }
  0xc2   : > { %3704 = vmatpush3.bf16.xpose.msk.msra.mxu1 %vm4392_vm3, %v3702_v17  ;;  %3659 = vmatprep.subr.msk.bf16.mxu0 %vm4392_vm3, %v3657_v18  ;;  %v3735_v17 = vpack.c.bf16 %v445_v11, %v444_v10  ;;  %v3783_v18 = vpack.c.bf16 %v477_v13, %v476_v12  ;;  %v455_v10 = vld [vmem:[%s4372_s17 + $0x2f8] sm:$0xff]  ;;  %v486_v11 = vld [vmem:[%s4372_s17 + $0x3f0] sm:$0xff] }
  0xc3   : > { %3707 = vmatprep.subr.msk.bf16.mxu1 %vm4392_vm3, %v3705_v19  ;;  %v428_v19 = vld [vmem:[%s4372_s17 + $0x220] sm:$0xff]  ;;  %v487_v12 = vld [vmem:[%s4372_s17 + $0x3f8] sm:$0xff] }
  0xc4   : > { %v3738_v26 = vpack.c.bf16 %v429_v20, %v428_v19  ;;  %v439_v19 = vld [vmem:[%s4372_s17 + $0x278] sm:$0xff]  ;;  %v470_v20 = vld [vmem:[%s4372_s17 + $0x370] sm:$0xff] }
  0xc9   : > { %3662 = vmatpush3.bf16.xpose.msk.msra.mxu0 %vm4392_vm3, %v3660_v27  ;;  %v3786_v27 = vpack.c.bf16 %v461_v22, %v460_v21  ;;  %v471_v21 = vld [vmem:[%s4372_s17 + $0x378] sm:$0xff] }
  0xca   : > { %3710 = vmatpush3.bf16.xpose.msk.msra.mxu1 %vm4392_vm3, %v3708_v28  ;;  %3665 = vmatprep.subr.msk.bf16.mxu0 %vm4392_vm3, %v3663_v29  ;;  %v3741_v28 = vpack.c.bf16 %v447_v24, %v446_v23  ;;  %v3789_v29 = vpack.c.bf16 %v479_v2, %v478_v25  ;;  %v3816_v23 = vpack.c.bf16 %v471_v21, %v470_v20  ;;  %v2063_v24 = vld [vmem:[%s4804_s6 + $0x8] sm:$0xff] }
  0xcb   : > { %3713 = vmatprep.subr.msk.bf16.mxu1 %vm4392_vm3, %v3711_v30  ;;  %v430_v30 = vld [vmem:[%s4372_s17 + $0x230] sm:$0xff] }
  0xcc   : > { %v3744_v38 = vpack.c.bf16 %v431_v31, %v430_v30 }
  0xd1   : > { %3668 = vmatpush3.bf16.xpose.msk.msra.mxu0 %vm4392_vm3, %v3666_v39  ;;  %v3792_v39 = vpack.c.bf16 %v463_v33, %v462_v1 }
  0xd2   : > { %3716 = vmatpush3.bf16.xpose.msk.msra.mxu1 %vm4392_vm3, %v3714_v40  ;;  %3671 = vmatprep.subr.msk.bf16.mxu0 %vm4392_vm3, %v3669_v41  ;;  %v3747_v40 = vpack.c.bf16 %v449_v35, %v448_v34  ;;  %v3795_v41 = vpack.c.bf16 %v481_v37, %v480_v36 }
  0xd3   : > { %3719 = vmatprep.subr.msk.bf16.mxu1 %vm4392_vm3, %v3717_v55  ;;  %v432_v55 = vld [vmem:[%s4372_s17 + $0x240] sm:$0xff] }
  0xd4   : > { %v3750_v49 = vpack.c.bf16 %v433_v42, %v432_v55 }
  0xd9   : > { %3674 = vmatpush3.bf16.xpose.msk.msra.mxu0 %vm4392_vm3, %v3672_v50  ;;  %v3798_v50 = vpack.c.bf16 %v465_v44, %v464_v43 }
  0xda   : > { %3722 = vmatpush3.bf16.xpose.msk.msra.mxu1 %vm4392_vm3, %v3720_v51  ;;  %3725 = vmatprep.subr.msk.bf16.mxu0 %vm4392_vm3, %v3723_v52  ;;  %v3753_v51 = vpack.c.bf16 %v451_v46, %v450_v45  ;;  %v3801_v52 = vpack.c.bf16 %v483_v48, %v482_v47 }
  0xdb   : > { %3773 = vmatprep.subr.msk.bf16.mxu1 %vm4392_vm3, %v3771_v53  ;;  %v434_v53 = vld [vmem:[%s4372_s17 + $0x250] sm:$0xff] }
  0xdc   : > { %v3756_v62 = vpack.c.bf16 %v435_v54, %v434_v53  ;;  %v2061_v53 = vld [vmem:[%s4803_s5 + $0x8] sm:$0xff] }
  0xe0   : > { %3324 = vmatmul.mubr.msk.f32.vlgmr.msra.gmra.mrb[0].mxu0 %vm1317_vm2, %v4428_v32 }
  0xe1   : > { %3360 = vmatmul.mubr.msk.f32.vlgmr.msra.gmra.mrb[0].mxu1 %vm1317_vm2, %v4428_v32  ;;  %3728 = vmatpush3.bf16.xpose.msk.msra.mxu0 %vm4392_vm3, %v3726_v61  ;;  %v485_v61 = vld [vmem:[%s4372_s17 + $0x3e8] sm:$0xff] }
  0xe2   : > { %3776 = vmatpush3.bf16.xpose.msk.msra.mxu1 %vm4392_vm3, %v3774_v0  ;;  %3325 = vmatprep.mubr.msk.f32.mxu0 %vm1317_vm2, %v4570_v3  ;;  %v3759_v0 = vpack.c.bf16 %v453_v59, %v452_v58 }
  0xe3   : > { %3361 = vmatprep.mubr.msk.f32.mxu1 %vm1317_vm2, %v4570_v3  ;;  %3731 = vmatprep.subr.msk.bf16.mxu0 %vm4392_vm3, %v3729_v4  ;;  %v3807_v4 = vpack.c.bf16 %v485_v61, %v484_v60 }
  0xe4   : > { %3326 = vmatmul.mubr.msk.f32.gmra.mrb[2].mxu0 %vm1317_vm2, %v4570_v3  ;;  %3779 = vmatprep.subr.msk.bf16.mxu1 %vm4392_vm3, %v3777_v5  ;;  %v436_v5 = vld [vmem:[%s4372_s17 + $0x260] sm:$0xff] }
  0xe5   : > { %3362 = vmatmul.mubr.msk.f32.gmra.mrb[2].mxu1 %vm1317_vm2, %v4570_v3  ;;  %3395 = vmatprep.mubr.msk.f32.mxu0 %vm1317_vm2, %v4428_v32  ;;  %v3762_v13 = vpack.c.bf16 %v437_v6, %v436_v5 }
  0xe6   : > { %3431 = vmatprep.mubr.msk.f32.mxu1 %vm1317_vm2, %v4428_v32 }
  0xe9   : > { %3734 = vmatpush3.bf16.xpose.msk.msra.mxu0 %vm4392_vm3, %v3732_v14  ;;  %v3810_v14 = vpack.c.bf16 %v469_v8, %v468_v7 }
  0xea   : > { %3782 = vmatpush3.bf16.xpose.msk.msra.mxu1 %vm4392_vm3, %v3780_v15  ;;  %3737 = vmatprep.subr.msk.bf16.mxu0 %vm4392_vm3, %v3735_v17  ;;  %v3765_v15 = vpack.c.bf16 %v455_v10, %v454_v9  ;;  %v3813_v17 = vpack.c.bf16 %v487_v12, %v486_v11 }
  0xeb   : > { %3785 = vmatprep.subr.msk.bf16.mxu1 %vm4392_vm3, %v3783_v18  ;;  %v438_v18 = vld [vmem:[%s4372_s17 + $0x270] sm:$0xff]  ;;  %s2763_s17 = scalar_lea.sflag [#allocation4], %s342_s27 }
  0xec   : > { %v3768_v22 = vpack.c.bf16 %v439_v19, %v438_v18 }
  0xf1   : > { %3740 = vmatpush3.bf16.xpose.msk.msra.mxu0 %vm4392_vm3, %v3738_v26 }
  0xf2   : > { %3788 = vmatpush3.bf16.xpose.msk.msra.mxu1 %vm4392_vm3, %v3786_v27  ;;  %3743 = vmatprep.subr.msk.bf16.mxu0 %vm4392_vm3, %v3741_v28 }
  0xf3   : > { %3791 = vmatprep.subr.msk.bf16.mxu1 %vm4392_vm3, %v3789_v29 }
  0xf9   : > { %3746 = vmatpush3.bf16.xpose.msk.msra.mxu0 %vm4392_vm3, %v3744_v38 }
  0xfa   : > { %3794 = vmatpush3.bf16.xpose.msk.msra.mxu1 %vm4392_vm3, %v3792_v39  ;;  %3749 = vmatprep.subr.msk.bf16.mxu0 %vm4392_vm3, %v3747_v40 }
  0xfb   : > { %3797 = vmatprep.subr.msk.bf16.mxu1 %vm4392_vm3, %v3795_v41 }
 0x101   : > { %3752 = vmatpush3.bf16.xpose.msk.msra.mxu0 %vm4392_vm3, %v3750_v49 }
 0x102   : > { %3800 = vmatpush3.bf16.xpose.msk.msra.mxu1 %vm4392_vm3, %v3798_v50  ;;  %3755 = vmatprep.subr.msk.bf16.mxu0 %vm4392_vm3, %v3753_v51 }
 0x103   : > { %3803 = vmatprep.subr.msk.bf16.mxu1 %vm4392_vm3, %v3801_v52  ;;  %v2060_v52 = vld [vmem:[%s4803_s5] sm:$0xff] }
 0x104   : > { %v2021_v25 = vpop.permute.xlu0 %2020 }
 0x108   : > { %v2026_v28 = vpop.permute.xlu0 %2025 }
 0x109   : > { %3758 = vmatpush3.bf16.xpose.msk.msra.mxu0 %vm4392_vm3, %v3756_v62 }
 0x10a   : > { %3806 = vmatpush3.bf16.xpose.msk.msra.mxu1 %vm4392_vm3, %v3804_v63  ;;  %3761 = vmatprep.subr.msk.bf16.mxu0 %vm4392_vm3, %v3759_v0 }
 0x10b   : > { %3809 = vmatprep.subr.msk.bf16.mxu1 %vm4392_vm3, %v3807_v4 }
 0x111   : > { %3764 = vmatpush3.bf16.xpose.msk.msra.mxu0 %vm4392_vm3, %v3762_v13 }
 0x112   : > { %3812 = vmatpush3.bf16.xpose.msk.msra.mxu1 %vm4392_vm3, %v3810_v14  ;;  %3767 = vmatprep.subr.msk.bf16.mxu0 %vm4392_vm3, %v3765_v15 }
 0x113   : > { %3815 = vmatprep.subr.msk.bf16.mxu1 %vm4392_vm3, %v3813_v17 }
 0x119   : > { %3770 = vmatpush3.bf16.xpose.msk.msra.mxu0 %vm4392_vm3, %v3768_v22 }
 0x11a   : > { %3818 = vmatpush3.bf16.xpose.msk.msra.mxu1 %vm4392_vm3, %v3816_v23 }
 0x120   : > { %3396 = vmatmul.mubr.msk.f32.vlgmr.msra.gmra.mrb[4].mxu0 %vm1317_vm2, %v4428_v32 }
 0x121   : > { %3432 = vmatmul.mubr.msk.f32.vlgmr.msra.gmra.mrb[4].mxu1 %vm1317_vm2, %v4428_v32  ;;  %3397 = vmatprep.mubr.msk.f32.mxu0 %vm1317_vm2, %v4570_v3  ;;  %v2062_v32 = vld [vmem:[%s4804_s6] sm:$0xff] }
 0x122   : > { %3433 = vmatprep.mubr.msk.f32.mxu1 %vm1317_vm2, %v4570_v3  ;;  %2066 = vperm.xlu1 %3910, %v2062_v32  }
 0x124   : > { %3398 = vmatmul.mubr.msk.f32.gmra.mrb[6].mxu0 %vm1317_vm2, %v4570_v3 }
 0x125   : > { %3434 = vmatmul.mubr.msk.f32.gmra.mrb[6].mxu1 %vm1317_vm2, %v4570_v3  ;;  %2145 = vmatprep.mubr.f32.mxu0 %v3976_v16 }
 0x126   : > { %2222 = vmatprep.mubr.f32.mxu1 %v3976_v16  ;;  %2071 = vperm.xlu1 %3910, %v2063_v24  }
 0x1a1   : > { %v2067_v23 = vpop.permute.xlu1 %2066 }
 0x1b3   : > { %v1774_v2 = vpop.f32.mrb[0].mxu0 }
 0x1b4   : > { %v1851_v26 = vpop.f32.mrb[0].mxu1  ;;  %v1776_v27 = vpop.f32.mrb[1].mxu0  ;;  %v2028_v29 = vadd.f32 %v2021_v25, %v1774_v2 }
 0x1b5   : > { %v1853_v3 = vpop.f32.mrb[1].mxu1  ;;  %v2030_v30 = vadd.f32 %v2021_v25, %v1851_v26  ;;  %v2029_v31 = vadd.f32 %v2021_v25, %v1776_v27 }
 0x1b6   : > { %v2031_v33 = vadd.f32 %v2021_v25, %v1853_v3  ;;  %v2044_v40 = vmax.f32 %v2028_v29, 0.0 }
 0x1b7   : > { %v1780_v1 = vpop.f32.mrb[2].mxu0  ;;  %v2046_v42 = vmax.f32 %v2030_v30, 0.0  ;;  %v2045_v43 = vmax.f32 %v2029_v31, 0.0 }
 0x1b8   : > { %v2036_v34 = vadd.f32 %v2026_v28, %v1780_v1  ;;  %v1857_v35 = vpop.f32.mrb[2].mxu1  ;;  %v1782_v36 = vpop.f32.mrb[3].mxu0  ;;  %v2047_v46 = vmax.f32 %v2031_v33, 0.0 }
 0x1b9   : > { %v2038_v37 = vadd.f32 %v2026_v28, %v1857_v35  ;;  %v2037_v38 = vadd.f32 %v2026_v28, %v1782_v36  ;;  %v1859_v39 = vpop.f32.mrb[3].mxu1 }
 0x1ba   : > { %v2052_v41 = vmax.f32 %v2036_v34, 0.0  ;;  %v2039_v55 = vadd.f32 %v2026_v28, %v1859_v39 }
 0x1bb   : > { %v2054_v44 = vmax.f32 %v2038_v37, 0.0  ;;  %v2053_v45 = vmax.f32 %v2037_v38, 0.0 }
 0x1bc   : > { %v3821_v47 = vpack.c.bf16 %v2052_v41, %v2044_v40  ;;  %v2055_v48 = vmax.f32 %v2039_v55, 0.0 }
 0x1bd   : > { %v3825_v49 = vpack.c.bf16 %v2054_v44, %v2046_v42  ;;  %v3819_v50 = vpack.c.bf16 %v2053_v45, %v2045_v43 }
 0x1be   : > { %v3823_v51 = vpack.c.bf16 %v2055_v48, %v2047_v46 }
 0x1bf   : > { %3820 = vmatprep.subr.bf16.mxu0 %v3819_v50 }
 0x1c0   : > { %3824 = vmatprep.subr.bf16.mxu1 %v3823_v51  ;;  %3822 = vmatpush1.bf16.msra.mxu0 %v3821_v47 }
 0x1c1   : > { %3826 = vmatpush1.bf16.msra.mxu1 %v3825_v49  ;;  %v2405_v49 = vld [vmem:[%s4805_s7] sm:$0x1] }
 0x1c3   : > { %3129 = vmatmul.mubr.msk.f32.vlgmr.msra.gmra.mrb[8].mxu0 %vm2074_vm4, %v2060_v52 }
 0x1c4   : > { %3131 = vmatmul.mubr.msk.f32.vlgmr.msra.gmra.mrb[8].mxu1 %vm2074_vm4, %v2060_v52  ;;  %2151 = vmatprep.mubr.f32.mxu0 %v3976_v16 }
 0x1c5   : > { %2228 = vmatprep.mubr.f32.mxu1 %v3976_v16 }
 0x1c7   : > { %3130 = vmatmul.mubr.msk.f32.gmra.mrb[10].mxu0 %vm2074_vm4, %v2061_v53 }
 0x1c8   : > { %3132 = vmatmul.mubr.msk.f32.gmra.mrb[10].mxu1 %vm2074_vm4, %v2061_v53  ;;  %2299 = vmatprep.mubr.f32.mxu0 %v3976_v16 }
 0x1c9   : > { %2376 = vmatprep.mubr.f32.mxu1 %v3976_v16 }
 0x1f3   : > { %v1928_v54 = vpop.f32.mrb[4].mxu0 }
 0x1f4   : > { %v2005_v56 = vpop.f32.mrb[4].mxu1  ;;  %v1930_v57 = vpop.f32.mrb[5].mxu0  ;;  %v2032_v59 = vadd.f32 %v2021_v25, %v1928_v54 }
 0x1f5   : > { %v2007_v58 = vpop.f32.mrb[5].mxu1  ;;  %v2034_v60 = vadd.f32 %v2021_v25, %v2005_v56  ;;  %v2033_v61 = vadd.f32 %v2021_v25, %v1930_v57 }
 0x1f6   : > { %v2035_v63 = vadd.f32 %v2021_v25, %v2007_v58  ;;  %v2048_v9 = vmax.f32 %v2032_v59, 0.0 }
 0x1f7   : > { %v1934_v62 = vpop.f32.mrb[6].mxu0  ;;  %v2050_v12 = vmax.f32 %v2034_v60, 0.0  ;;  %v2049_v13 = vmax.f32 %v2033_v61, 0.0 }
 0x1f8   : > { %v2040_v0 = vadd.f32 %v2026_v28, %v1934_v62  ;;  %v2011_v4 = vpop.f32.mrb[6].mxu1  ;;  %v1936_v5 = vpop.f32.mrb[7].mxu0  ;;  %v2051_v17 = vmax.f32 %v2035_v63, 0.0 }
 0x1f9   : > { %v2042_v6 = vadd.f32 %v2026_v28, %v2011_v4  ;;  %v2041_v7 = vadd.f32 %v2026_v28, %v1936_v5  ;;  %v2013_v8 = vpop.f32.mrb[7].mxu1 }
 0x1fa   : > { %v2056_v10 = vmax.f32 %v2040_v0, 0.0  ;;  %v2043_v11 = vadd.f32 %v2026_v28, %v2013_v8  ;;  %v2072_v28 = vpop.permute.xlu1 %2071 }
 0x1fb   : > { %v2058_v14 = vmax.f32 %v2042_v6, 0.0  ;;  %v2057_v15 = vmax.f32 %v2041_v7, 0.0 }
 0x1fc   : > { %v3829_v18 = vpack.c.bf16 %v2056_v10, %v2048_v9  ;;  %v2059_v19 = vmax.f32 %v2043_v11, 0.0 }
 0x1fd   : > { %v3833_v20 = vpack.c.bf16 %v2058_v14, %v2050_v12  ;;  %v3827_v21 = vpack.c.bf16 %v2057_v15, %v2049_v13 }
 0x1fe   : > { %v3831_v22 = vpack.c.bf16 %v2059_v19, %v2051_v17 }
 0x1ff   : > { %3828 = vmatprep.subr.bf16.mxu0 %v3827_v21 }
 0x200   : > { %3832 = vmatprep.subr.bf16.mxu1 %v3831_v22  ;;  %3830 = vmatpush1.bf16.msra.mxu0 %v3829_v18  ;;  %v2412_v18 = vlaneseq }
 0x201   : > { %3834 = vmatpush1.bf16.msra.mxu1 %v3833_v20  ;;  %v3977_v20 = vmov 1966171168  }
 0x202   : > { %v2413_v19 = vshrl.u32 %v2412_v18, 7  ;;  %v2716_v21 = vunpack.c.l.s4 %v3977_v20 }
 0x203   : > { %3133 = vmatmul.mubr.msk.f32.vlgmr.msra.gmra.mrb[12].mxu0 %vm2074_vm4, %v2060_v52 }
 0x204   : > { %3135 = vmatmul.mubr.msk.f32.vlgmr.msra.gmra.mrb[12].mxu1 %vm2074_vm4, %v2060_v52  ;;  %2305 = vmatprep.mubr.f32.mxu0 %v3976_v16  ;;  %v2414_v22 = vsub.s32 0, %v2413_v19 }
 0x205   : > { %2382 = vmatprep.mubr.f32.mxu1 %v3976_v16 }
 0x207   : > { %3134 = vmatmul.mubr.msk.f32.gmra.mrb[14].mxu0 %vm2074_vm4, %v2061_v53 }
 0x208   : > { %3136 = vmatmul.mubr.msk.f32.gmra.mrb[14].mxu1 %vm2074_vm4, %v2061_v53  ;;  %2483 = vmatprep.mubr.f32.mxu0 %v3976_v16 }
 0x209   : > { %2554 = vmatprep.mubr.f32.mxu1 %v3976_v16 }
 0x296   : > { %v2147_v32 = vpop.f32.mrb[8].mxu0 }
 0x297   : > { %v2148_v24 = vadd.f32 %v2147_v32, %v2067_v23  ;;  %v2224_v25 = vpop.f32.mrb[8].mxu1  ;;  %v2149_v2 = vpop.f32.mrb[9].mxu0  ;;  %v2717_v32 = vunpack.c.0.s8 %v2716_v21 }
 0x298   : > { %v2225_v26 = vadd.f32 %v2224_v25, %v2067_v23  ;;  %v2150_v27 = vadd.f32 %v2149_v2, %v2067_v23  ;;  %v2226_v3 = vpop.f32.mrb[9].mxu1 }
 0x299   : > { %v2227_v29 = vadd.f32 %v2226_v3, %v2067_v23  ;;  %v2389_v31 = vmax.f32 %v2148_v24, 0.0  ;;  %v2720_v3 = vsub.s32 %v2717_v32, %v2413_v19 }
 0x29a   : > { %v2153_v30 = vpop.f32.mrb[10].mxu0  ;;  %v2391_v35 = vmax.f32 %v2225_v26, 0.0  ;;  %v2390_v36 = vmax.f32 %v2150_v27, 0.0 }
 0x29b   : > { %v2230_v1 = vpop.f32.mrb[10].mxu1  ;;  %v2155_v33 = vpop.f32.mrb[11].mxu0  ;;  %v2154_v34 = vadd.f32 %v2153_v30, %v2072_v28  ;;  %v2392_v40 = vmax.f32 %v2227_v29, 0.0 }
 0x29c   : > { %v2156_v37 = vadd.f32 %v2155_v33, %v2072_v28  ;;  %v2232_v38 = vpop.f32.mrb[11].mxu1  ;;  %v2231_v39 = vadd.f32 %v2230_v1, %v2072_v28 }
 0x29d   : > { %v2233_v41 = vadd.f32 %v2232_v38, %v2072_v28  ;;  %v2397_v55 = vmax.f32 %v2154_v34, 0.0 }
 0x29e   : > { %v2398_v42 = vmax.f32 %v2156_v37, 0.0  ;;  %v2399_v43 = vmax.f32 %v2231_v39, 0.0 }
 0x29f   : > { %v2400_v44 = vmax.f32 %v2233_v41, 0.0  ;;  %v3837_v45 = vpack.c.bf16 %v2397_v55, %v2389_v31 }
 0x2a0   : > { %v3835_v46 = vpack.c.bf16 %v2398_v42, %v2390_v36  ;;  %v3841_v47 = vpack.c.bf16 %v2399_v43, %v2391_v35 }
 0x2a1   : > { %v3839_v48 = vpack.c.bf16 %v2400_v44, %v2392_v40 }
 0x2a2   : > { %3836 = vmatprep.subr.bf16.mxu0 %v3835_v46 }
 0x2a3   : > { %3840 = vmatprep.subr.bf16.mxu1 %v3839_v48  ;;  %3838 = vmatpush1.bf16.msra.mxu0 %v3837_v45 }
 0x2a4   : > { %3842 = vmatpush1.bf16.msra.mxu1 %v3841_v47 }
 0x2a6   : > { %3137 = vmatmul.mubr.msk.f32.vlgmr.msra.gmra.mrb[16].mxu0 %vm2074_vm4, %v2405_v49 }
 0x2a7   : > { %3138 = vmatmul.mubr.msk.f32.vlgmr.msra.gmra.mrb[16].mxu1 %vm2074_vm4, %v2405_v49  ;;  %2625 = vmatprep.mubr.f32.mxu0 %v3976_v16 }
 0x2a8   : > { %2696 = vmatprep.mubr.f32.mxu1 %v3976_v16 }
 0x2d6   : > { %v2301_v50 = vpop.f32.mrb[12].mxu0 }
 0x2d7   : > { %v2378_v51 = vpop.f32.mrb[12].mxu1  ;;  %v2303_v52 = vpop.f32.mrb[13].mxu0  ;;  %v2302_v54 = vadd.f32 %v2301_v50, %v2067_v23 }
 0x2d8   : > { %v2380_v53 = vpop.f32.mrb[13].mxu1  ;;  %v2379_v56 = vadd.f32 %v2378_v51, %v2067_v23  ;;  %v2304_v57 = vadd.f32 %v2303_v52, %v2067_v23 }
 0x2d9   : > { %v2381_v59 = vadd.f32 %v2380_v53, %v2067_v23  ;;  %v2393_v5 = vmax.f32 %v2302_v54, 0.0  ;;  %v2410_v23 = vpop.permute.xlu0 %2409 }
 0x2da   : > { %v2307_v58 = vpop.f32.mrb[14].mxu0  ;;  %v2395_v8 = vmax.f32 %v2379_v56, 0.0  ;;  %v2394_v16 = vmax.f32 %v2304_v57, 0.0  ;;  %v2415_v24 = vrot.slane %v2410_v23, %v2414_v22 }
 0x2db   : > { %v2308_v60 = vadd.f32 %v2307_v58, %v2072_v28  ;;  %v2384_v61 = vpop.f32.mrb[14].mxu1  ;;  %v2309_v62 = vpop.f32.mrb[15].mxu0  ;;  %v2396_v11 = vmax.f32 %v2381_v59, 0.0 }
 0x2dc   : > { %v2385_v63 = vadd.f32 %v2384_v61, %v2072_v28  ;;  %v2310_v0 = vadd.f32 %v2309_v62, %v2072_v28  ;;  %v2386_v4 = vpop.f32.mrb[15].mxu1 }
 0x2dd   : > { %v2401_v6 = vmax.f32 %v2308_v60, 0.0  ;;  %v2387_v7 = vadd.f32 %v2386_v4, %v2072_v28 }
 0x2de   : > { %v2403_v9 = vmax.f32 %v2385_v63, 0.0  ;;  %v2402_v10 = vmax.f32 %v2310_v0, 0.0 }
 0x2df   : > { %v3845_v12 = vpack.c.bf16 %v2401_v6, %v2393_v5  ;;  %v2404_v13 = vmax.f32 %v2387_v7, 0.0 }
 0x2e0   : > { %v3849_v14 = vpack.c.bf16 %v2403_v9, %v2395_v8  ;;  %v3843_v15 = vpack.c.bf16 %v2402_v10, %v2394_v16 }
 0x2e1   : > { %v3847_v17 = vpack.c.bf16 %v2404_v13, %v2396_v11 }
 0x2e2   : > { %3844 = vmatprep.subr.bf16.mxu0 %v3843_v15 }
 0x2e3   : > { %3848 = vmatprep.subr.bf16.mxu1 %v3847_v17  ;;  %3846 = vmatpush1.bf16.msra.mxu0 %v3845_v12 }
 0x2e4   : > { %3850 = vmatpush1.bf16.msra.mxu1 %v3849_v14 }
 0x2e6   : > { %3139 = vmatmul.mubr.msk.f32.vlgmr.msra.gmra.mrb[18].mxu0 %vm2074_vm4, %v2405_v49 }
 0x2e7   : > { %3140 = vmatmul.mubr.msk.f32.vlgmr.msra.gmra.mrb[18].mxu1 %vm2074_vm4, %v2405_v49 }
 0x379   : > { %v2485_v25 = vpop.f32.mrb[16].mxu0 }
 0x37a   : > { %v2486_v2 = vadd.f32 %v2485_v25, %v2415_v24  ;;  %v2556_v26 = vpop.f32.mrb[16].mxu1  ;;  %v2487_v27 = vpop.f32.mrb[17].mxu0 }
 0x37b   : > { %v2557_v28 = vadd.f32 %v2556_v26, %v2415_v24  ;;  %v2488_v29 = vadd.f32 %v2487_v27, %v2415_v24  ;;  %v2558_v30 = vpop.f32.mrb[17].mxu1 }
 0x37c   : > { %v2559_v31 = vadd.f32 %v2558_v30, %v2415_v24 }
 0x37d   : > { %v2711_v1 = vcombine.low %v2486_v2, %v2488_v29 }
 0x37e   : > { %v2712_v33 = vcombine.low %v2557_v28, %v2559_v31 }
 0x37f   : > { %v2721_v34 = vrot.slane %v2711_v1, %v2720_v3 }
 0x380   : > { %v2728_v35 = vrot.slane %v2712_v33, %v2720_v3 }
 0x382   : > { %v2743_v36 = vcombine.low %v2721_v34, %v2728_v35 }
 0x384   : > { %v2751_v49 = vrot.slane %v2743_v36, %v2720_v3 }
 0x3b9   : > { %v2627_v37 = vpop.f32.mrb[18].mxu0 }
 0x3ba   : > { %v2628_v38 = vadd.f32 %v2627_v37, %v2415_v24  ;;  %v2698_v39 = vpop.f32.mrb[18].mxu1  ;;  %v2629_v40 = vpop.f32.mrb[19].mxu0 }
 0x3bb   : > { %v2699_v41 = vadd.f32 %v2698_v39, %v2415_v24  ;;  %v2630_v55 = vadd.f32 %v2629_v40, %v2415_v24  ;;  %v2700_v42 = vpop.f32.mrb[19].mxu1 }
 0x3bc   : > { %v2701_v43 = vadd.f32 %v2700_v42, %v2415_v24 }
 0x3bd   : > { %v2713_v44 = vcombine.low %v2628_v38, %v2630_v55 }
 0x3be   : > { %v2714_v45 = vcombine.low %v2699_v41, %v2701_v43 }
 0x3bf   : > { %v2735_v46 = vrot.slane %v2713_v44, %v2720_v3 }
 0x3c0   : > { %v2742_v47 = vrot.slane %v2714_v45, %v2720_v3 }
 0x3c2   : > { %v2744_v48 = vcombine.low %v2735_v46, %v2742_v47 }
 0x3c4   : > { %v2758_v50 = vrot.slane %v2744_v48, %v2720_v3 }
 0x3c6   : > { %v2759_v51 = vcombine.low %v2751_v49, %v2758_v50 }
 0x3c8   : > { %2761 = vst [vmem:[%s344_s29] sm:$0xff] %v2759_v51 }
 0x3c9   : > { %3924 = shalt.err (!%p3921_p3)
}
 0x3ca   : > { %s3925_s22 = scalar_lea.hbm %s4756_s15, 128  ;;  %s3929_s28 = scalar_lea.hbm %s4807_s9, 256 }
 0x3cb   : > { %p3926_p4 = scmp.ne.s32.totalorder %s4756_s15, %s3925_s22  ;;  %p3930_p9 = scmp.lt.u32.totalorder %s4756_s15, %s4807_s9 }
 0x3cc   : > { %p3931_p10 = scmp.lt.u32.totalorder %s3929_s28, %s3925_s22  ;;  %p3933_p12 = scmp.lt.u32.totalorder %s3925_s22, %s4756_s15 }
 0x3cd   : > { %p3927_p7 = pnand %p3926_p4, %p4067_p5 }
 0x3ce   : > { %p3932_p11 = por %p3931_p10, %p3930_p9 }
 0x3cf   : > { %p3928_p8 = pneg %p3927_p7 }
 0x3d0   : > { %p3934_p13 = por %p3933_p12, %p3932_p11 }
 0x3d2   : > { %p3935_p0 = pnand %p3934_p13, %p3928_p8 }
 0x3d4   : > { %3938 = shalt.err (!%p3935_p0)
}
 0x3d5   : > { %3867 = dma.vmem_to_hbm [thread:$0]  (%p4067_p5), %s4758_s30, 128, %s4756_s15, %s2763_s17  }
 0x3d6 PF: > { %p3873_p1 = scmp.ge.s32.totalorder %s3973_s14, 2  ;;  %s2789_s8 = sand.u32 1, %s3961_s11  }
 0x3d7   : > { %s2790_s18 = scalar_lea.sflag [#allocation4], %s2789_s8 }
 0x3d8   : > { %p3870_p2 = pnand %p3873_p1, %p4071_p6 }
 0x3da   : > { %3956 = dma.done.wait (!%p3870_p2), %s2790_s18, 128  }
 0x3db   : > { %3958 = vsyncadd (!%p3870_p2), %s2790_s18, 4294967168  ;;  %p21_p3 = scmp.ge.s32.totalorder %s4055_s16, 4   ;;  %s4814_s11 = smov %s3965_s12 }
 0x3dc   : > { %s4815_s12 = smov %s3969_s13  ;;  %s4816_s13 = smov %s4065_s19 }
 0x3dd   : > { %s4817_s14 = smov %s4055_s16  ;;  %23 = sbr.rel (!%p21_p3) target bundleno = 6 (0x6), region = 94 }
 0x3e4   :  { %2795 = vsyncpa [#allocation4], 1 }
 0x3e5   :  { %2797 = vsyncpa [#allocation4 + $0x1], 1 }

</bundles_post_ra>
